<compile_context>
chip_gen: v7x
topology: tpu7x:2x2x1
jax: 0.10.0
libtpu: 0.0.40
codegen_flags: <defaults>
</compile_context>

<pallas_src>
import numpy as np
import jax
import jax.numpy as jnp
from jax.experimental import pallas as pl
from jax.experimental.pallas import tpu as pltpu

EMBED_DIM = 32
E = EMBED_DIM
OUT_DIM = 2          # final_layer out_dim; forward uses column 0 (mean), 1 (std)
NUM_GRAPHS = 2       # input.num_graphs

# (name, nodes-per-graph, raw feature dim); "gen" must be node_type index 3
NODE_TYPES = [("substation", 5, 3), ("load", 4, 4), ("line", 7, 5), ("gen", 6, 6)]
N_PER_GRAPH = sum(n for _, n, _ in NODE_TYPES)       # 22
N_TOTAL = NUM_GRAPHS * N_PER_GRAPH                   # 44
N_GEN = NODE_TYPES[3][1]                             # 6
NG_TOTAL = NUM_GRAPHS * N_GEN                        # 12
F_SUM = sum(f for _, _, f in NODE_TYPES)             # 18
LANES = 128

# the gen block slice must start on a sublane boundary (keeps it a zero-cost view)
assert (N_TOTAL - NG_TOTAL) % 8 == 0, "gen block not sublane-aligned; repack NODE_TYPES"

# ---- packed output slab: one lane-dense (8,128) f32 tile, sliced in the wrapper ----
OUT_ROWS = 8
MEAN_COL, STD_COL, VAL_COL = 0, 8, 16


def _align8(n):
    return ((n + 7) // 8) * 8


# ---- single packed f32 input buffer (lane width = 128), 8-aligned segment starts ----
OFF_X      = 0                                # [N_TOTAL, F_SUM] node features (rest zero)
OFF_WEMB   = _align8(OFF_X + N_TOTAL)         # [E, E]   block-diag embedders (rows>=F_SUM zero)
OFF_WG1    = _align8(OFF_WEMB + E)            # [E, E]   conv1 lin
OFF_WG2    = _align8(OFF_WG1 + E)             # [E, E]   conv2 lin
OFF_BEMB   = _align8(OFF_WG2 + E)             # [N_TOTAL, E] per-node embedder bias
OFF_WVG    = _align8(OFF_BEMB + N_TOTAL)      # [NG, E]  val_layer weight (conv half)
OFF_WVS    = _align8(OFF_WVG + NG_TOTAL)      # [NG, E]  val_layer weight (skip half)
OFF_AC1    = _align8(OFF_WVS + NG_TOTAL)      # [E, 2]   conv1 (a_dst, a_src) columns
OFF_AC2    = _align8(OFF_AC1 + E)             # [E, 2]   conv2 (a_dst, a_src) columns
OFF_WF     = _align8(OFF_AC2 + E)             # [2E, 2]  final_layer weight
OFF_BIAS   = _align8(OFF_WF + 2 * E)          # row0: bg1[0:E], row1: bg2[0:E], row2: bf[0:2]
OFF_MASK   = _align8(OFF_BIAS + 3)            # [N_TOTAL, N_TOTAL] additive mask (0 / -1e30)
OFF_DEGINV = _align8(OFF_MASK + N_TOTAL)      # [N_TOTAL, 1] 1/deg (aggr='mean')
OFF_SCATM  = _align8(OFF_DEGINV + N_TOTAL)    # [NG, 128] one-hot: gen g -> col MEAN_COL + g%6
OFF_SCATS  = _align8(OFF_SCATM + NG_TOTAL)    # [NG, 128] one-hot: gen g -> col STD_COL + g%6
OFF_SCATV  = _align8(OFF_SCATS + NG_TOTAL)    # [NG, 128] one-hot: gen g -> col VAL_COL
OFF_SEL    = _align8(OFF_SCATV + NG_TOTAL)    # [8, NG]   selector: row b picks gens of graph b
OFF_OBIAS  = _align8(OFF_SEL + OUT_ROWS)      # [8, 128]  val_layer bias at (b, VAL_COL)
P_ROWS     = _align8(OFF_OBIAS + OUT_ROWS)    # 520


def graphnet_kernel(p_ref, out_ref):
    f32, bf16 = jnp.float32, jnp.bfloat16

    # --- packed parameters / inputs: static VMEM slices ---
    x       = p_ref[OFF_X:OFF_X + N_TOTAL, 0:E]                 # cols F_SUM:E are zero
    w_emb   = p_ref[OFF_WEMB:OFF_WEMB + E, 0:E].astype(bf16)    # rows F_SUM:E are zero
    wg1     = p_ref[OFF_WG1:OFF_WG1 + E, 0:E].astype(bf16)
    wg2     = p_ref[OFF_WG2:OFF_WG2 + E, 0:E].astype(bf16)
    b_emb   = p_ref[OFF_BEMB:OFF_BEMB + N_TOTAL, 0:E]
    wv_g    = p_ref[OFF_WVG:OFF_WVG + NG_TOTAL, 0:E]
    wv_s    = p_ref[OFF_WVS:OFF_WVS + NG_TOTAL, 0:E]
    ac1     = p_ref[OFF_AC1:OFF_AC1 + E, 0:2].astype(bf16)      # cols = (a_dst, a_src)
    ac2     = p_ref[OFF_AC2:OFF_AC2 + E, 0:2].astype(bf16)
    wf_top  = p_ref[OFF_WF:OFF_WF + E, 0:2].astype(bf16)        # acts on conv output
    wf_bot  = p_ref[OFF_WF + E:OFF_WF + 2 * E, 0:2].astype(bf16)  # acts on skip
    bg1     = p_ref[OFF_BIAS:OFF_BIAS + 1, 0:E]
    bg2     = p_ref[OFF_BIAS + 1:OFF_BIAS + 2, 0:E]
    bfin    = p_ref[OFF_BIAS + 2:OFF_BIAS + 3, 0:2]
    mask    = p_ref[OFF_MASK:OFF_MASK + N_TOTAL, 0:N_TOTAL]     # additive (0 / -1e30)
    deg_inv = p_ref[OFF_DEGINV:OFF_DEGINV + N_TOTAL, 0:1]
    scat_m  = p_ref[OFF_SCATM:OFF_SCATM + NG_TOTAL, :]
    scat_s  = p_ref[OFF_SCATS:OFF_SCATS + NG_TOTAL, :]
    scat_v  = p_ref[OFF_SCATV:OFF_SCATV + NG_TOTAL, :]
    sel     = p_ref[OFF_SEL:OFF_SEL + OUT_ROWS, 0:NG_TOTAL]
    obias   = p_ref[OFF_OBIAS:OFF_OBIAS + OUT_ROWS, :]

    # hetero node embedders fused as one block-diagonal Linear (bf16 in, f32 acc)
    h = jnp.dot(x.astype(bf16), w_emb, preferred_element_type=f32) + b_emb
    skip = h                                              # skip_connection (pre-conv)

    def gat_layer(x_in, wg, a_cols, bg):
        hh = jnp.dot(x_in.astype(bf16), wg, preferred_element_type=f32)    # lin(x) [N,E]
        hh_b = hh.astype(bf16)
        scores = jnp.dot(hh_b, a_cols, preferred_element_type=f32)         # [N,2]
        s_dst = scores[:, 0:1]                                             # [N,1]
        s_src = jnp.transpose(scores[:, 1:2])                              # [1,N] tiny transpose
        s = s_dst + s_src                                                  # s[i,j]: edge j -> i
        s = jnp.where(s > 0, s, 0.2 * s)                                   # LeakyReLU(0.2)
        s = s + mask                                                       # additive non-edge mask
        p = jnp.exp(s - jnp.max(s, axis=-1, keepdims=True))                # masked -> exactly 0
        # softmax denominator (EUP reciprocal) fused with aggr='mean' degree division
        norm = pl.reciprocal(jnp.sum(p, axis=-1, keepdims=True), approx=True) * deg_inv
        msg = jnp.dot(p.astype(bf16), hh_b, preferred_element_type=f32)
        return msg * norm + bg

    h = jnp.maximum(gat_layer(h, wg1, ac1, bg1), 0.0) + h
    h = jnp.maximum(gat_layer(h, wg2, ac2, bg2), 0.0) + h
    # torch forward applies conv2 a second time (conv3 is never used)
    h = jnp.maximum(gat_layer(h, wg2, ac2, bg2), 0.0) + h

    gen = h[N_TOTAL - NG_TOTAL:, :]                        # node_type == 3 rows (8-aligned start)
    gen0 = skip[N_TOTAL - NG_TOTAL:, :]

    # final_layer on cat([gen, skip], dim=1) without materialising a concat
    act = (jnp.dot(gen.astype(bf16), wf_top, preferred_element_type=f32)
           + jnp.dot(gen0.astype(bf16), wf_bot, preferred_element_type=f32)
           + bfin)                                                          # [NG, 2]
    a0 = act[:, 0:1]
    a1 = act[:, 1:2]
    sp = jnp.maximum(a1, 0.0) + jnp.log(1.0 + jnp.exp(-jnp.abs(a1)))        # softplus

    # val_layer on gen_cat.reshape(B,-1): per-gen dot with its weight slice (exact f32)
    per_gen = (jnp.sum(gen * wv_g, axis=-1, keepdims=True)
               + jnp.sum(gen0 * wv_s, axis=-1, keepdims=True))              # [NG, 1]

    # Scatter (mean, std, per-graph value sum) into one lane-dense (8,128) slab
    # with a single tiny f32 MXU matmul + one unmasked store.
    payload = a0 * scat_m + sp * scat_s + per_gen * scat_v                  # [NG, 128]
    out_ref[...] = jnp.dot(sel, payload, preferred_element_type=f32) + obias


def make_forward():
    call = pl.pallas_call(
        graphnet_kernel,
        out_shape=jax.ShapeDtypeStruct((OUT_ROWS, LANES), jnp.float32),
        in_specs=[pl.BlockSpec(memory_space=pltpu.MemorySpace.VMEM)],
        out_specs=pl.BlockSpec(memory_space=pltpu.MemorySpace.VMEM),
    )

    @jax.jit
    def fwd(packed):
        out = call(packed)
        action_mean = out[:NUM_GRAPHS, MEAN_COL:MEAN_COL + N_GEN]
        action_std = out[:NUM_GRAPHS, STD_COL:STD_COL + N_GEN]
        value = out[:NUM_GRAPHS, VAL_COL:VAL_COL + 1]
        return action_mean, action_std, value

    return fwd


# ------------------------- host-side setup / reference -------------------------

def build_problem(key):
    keys = iter(jax.random.split(key, 23))

    # packed block-diagonal node features / embedder weights / per-node bias
    x_blk = np.zeros((N_TOTAL, F_SUM), np.float32)
    w_emb = np.zeros((F_SUM, EMBED_DIM), np.float32)
    b_emb = np.zeros((N_TOTAL, EMBED_DIM), np.float32)
    row_off, col_off = 0, 0
    for (_, n, f) in NODE_TYPES:
        rows = NUM_GRAPHS * n
        xt = np.asarray(jax.random.normal(next(keys), (rows, f), jnp.float32))
        bound = 1.0 / np.sqrt(f)
        wt = np.asarray(jax.random.uniform(next(keys), (f, EMBED_DIM), jnp.float32, -bound, bound))
        bt = np.asarray(jax.random.uniform(next(keys), (EMBED_DIM,), jnp.float32, -bound, bound))
        x_blk[row_off:row_off + rows, col_off:col_off + f] = xt
        w_emb[col_off:col_off + f, :] = wt
        b_emb[row_off:row_off + rows, :] = bt[None, :]
        row_off += rows
        col_off += f

    # dense block-diagonal (per graph) adjacency, undirected, with self loops
    adj = np.zeros((N_TOTAL, N_TOTAL), np.float32)
    type_row_offsets, off = [], 0
    for (_, n, _) in NODE_TYPES:
        type_row_offsets.append(off)
        off += NUM_GRAPHS * n
    k_adj = next(keys)
    for b in range(NUM_GRAPHS):
        gidx = np.concatenate([type_row_offsets[t] + b * NODE_TYPES[t][1] + np.arange(NODE_TYPES[t][1])
                               for t in range(len(NODE_TYPES))])
        a = np.asarray(jax.random.bernoulli(jax.random.fold_in(k_adj, b), 0.3,
                                            (N_PER_GRAPH, N_PER_GRAPH)), np.float32)
        a = np.maximum(a, a.T)
        adj[np.ix_(gidx, gidx)] = a
    np.fill_diagonal(adj, 1.0)   # GATConv add_self_loops=True

    def glorot(k, shape):
        lim = float(np.sqrt(6.0 / (shape[0] + shape[-1])))
        return np.asarray(jax.random.uniform(k, shape, jnp.float32, -lim, lim))

    wg1 = glorot(next(keys), (E, E))
    asrc1 = glorot(next(keys), (1, E))
    adst1 = glorot(next(keys), (1, E))
    bg1 = np.zeros((1, E), np.float32)
    wg2 = glorot(next(keys), (E, E))
    asrc2 = glorot(next(keys), (1, E))
    adst2 = glorot(next(keys), (1, E))
    bg2 = np.zeros((1, E), np.float32)

    def normc(k, shape, std=0.001):   # normc_initializer(0.001)
        w = np.asarray(jax.random.normal(k, shape, jnp.float32))
        return (w * std / np.sqrt((w ** 2).sum(axis=0, keepdims=True))).astype(np.float32)

    wf = normc(next(keys), (2 * E, OUT_DIM))
    bnd_f = 1.0 / np.sqrt(2 * E)
    bf = np.asarray(jax.random.uniform(next(keys), (1, OUT_DIM), jnp.float32, -bnd_f, bnd_f))
    wv = normc(next(keys), (2 * N_GEN * E, 1))
    bnd_v = 1.0 / np.sqrt(2 * N_GEN * E)
    bv = np.asarray(jax.random.uniform(next(keys), (1, 1), jnp.float32, -bnd_v, bnd_v))
    # val_layer weight laid out per-generator-slot, tiled across graphs
    wv_bc = np.tile(wv.reshape(N_GEN, 2 * E), (NUM_GRAPHS, 1)).astype(np.float32)

    params = dict(w_emb=w_emb, b_emb=b_emb, wg1=wg1, asrc1=asrc1, adst1=adst1, bg1=bg1,
                  wg2=wg2, asrc2=asrc2, adst2=adst2, bg2=bg2, wf=wf, bf=bf,
                  wv_bc=wv_bc, bv=bv)
    return x_blk, adj, params


def pack_all(x_blk, adj, p):
    """Everything the kernel needs in a single f32 [P_ROWS, 128] buffer (1 DMA)."""
    buf = np.zeros((P_ROWS, LANES), np.float32)
    buf[OFF_X:OFF_X + N_TOTAL, :F_SUM] = x_blk
    buf[OFF_WEMB:OFF_WEMB + F_SUM, :E] = p["w_emb"]          # rows F_SUM:E stay zero
    buf[OFF_WG1:OFF_WG1 + E, :E] = p["wg1"]
    buf[OFF_WG2:OFF_WG2 + E, :E] = p["wg2"]
    buf[OFF_BEMB:OFF_BEMB + N_TOTAL, :E] = p["b_emb"]
    buf[OFF_WVG:OFF_WVG + NG_TOTAL, :E] = p["wv_bc"][:, :E]
    buf[OFF_WVS:OFF_WVS + NG_TOTAL, :E] = p["wv_bc"][:, E:]
    buf[OFF_AC1:OFF_AC1 + E, 0] = p["adst1"][0]
    buf[OFF_AC1:OFF_AC1 + E, 1] = p["asrc1"][0]
    buf[OFF_AC2:OFF_AC2 + E, 0] = p["adst2"][0]
    buf[OFF_AC2:OFF_AC2 + E, 1] = p["asrc2"][0]
    buf[OFF_WF:OFF_WF + 2 * E, :2] = p["wf"]
    buf[OFF_BIAS, :E] = p["bg1"][0]
    buf[OFF_BIAS + 1, :E] = p["bg2"][0]
    buf[OFF_BIAS + 2, :2] = p["bf"][0]
    # additive attention mask + fused-mean degree inverse (self loops included)
    buf[OFF_MASK:OFF_MASK + N_TOTAL, :N_TOTAL] = np.where(adj > 0, 0.0, -1e30).astype(np.float32)
    deg = adj.sum(-1, keepdims=True).astype(np.float32)
    buf[OFF_DEGINV:OFF_DEGINV + N_TOTAL, 0:1] = (1.0 / deg).astype(np.float32)
    # output scatter one-hots + per-graph selector + value bias slab
    for g in range(NG_TOTAL):
        b, j = divmod(g, N_GEN)
        buf[OFF_SCATM + g, MEAN_COL + j] = 1.0
        buf[OFF_SCATS + g, STD_COL + j] = 1.0
        buf[OFF_SCATV + g, VAL_COL] = 1.0
        buf[OFF_SEL + b, g] = 1.0
    buf[OFF_OBIAS:OFF_OBIAS + NUM_GRAPHS, VAL_COL] = p["bv"][0, 0]
    return buf


def reference(x_blk, adj, p):
    # Plain-JAX reference of the torch forward.  Dots use bf16 operands with f32
    # accumulation (matching the kernel's MXU policy); division is exact, so the
    # only kernel-vs-reference rounding delta is the EUP approximate reciprocal.
    f32, bf16 = jnp.float32, jnp.bfloat16

    def mm(a, b):
        return jnp.dot(a.astype(bf16), b.astype(bf16), preferred_element_type=f32)

    adj = jnp.asarray(adj, f32)
    deg = adj.sum(-1, keepdims=True)
    h = mm(jnp.asarray(x_blk), jnp.asarray(p["w_emb"])) + jnp.asarray(p["b_emb"])
    skip = h

    def gat(x_in, wg, a_src, a_dst, bg):
        hh = mm(x_in, wg)
        s_dst = mm(hh, a_dst.T)                     # [N,1]
        s_src = mm(hh, a_src.T)                     # [N,1]
        s = s_dst + s_src.T
        s = jnp.where(s > 0, s, 0.2 * s)
        s = jnp.where(adj > 0, s, -1e30)
        pm = jnp.exp(s - s.max(-1, keepdims=True))
        return mm(pm, hh) / (pm.sum(-1, keepdims=True) * deg) + bg

    h = jnp.maximum(gat(h, p["wg1"], p["asrc1"], p["adst1"], p["bg1"]), 0.0) + h
    h = jnp.maximum(gat(h, p["wg2"], p["asrc2"], p["adst2"], p["bg2"]), 0.0) + h
    h = jnp.maximum(gat(h, p["wg2"], p["asrc2"], p["adst2"], p["bg2"]), 0.0) + h

    gen_cat = jnp.concatenate([h[-NG_TOTAL:], skip[-NG_TOTAL:]], axis=-1)    # [NG, 2E]
    act = mm(gen_cat, jnp.asarray(p["wf"])) + jnp.asarray(p["bf"])
    mean = act[:, 0].reshape(NUM_GRAPHS, N_GEN)
    std = jax.nn.softplus(act[:, 1]).reshape(NUM_GRAPHS, N_GEN)
    value = ((gen_cat * jnp.asarray(p["wv_bc"])).sum(-1)
             .reshape(NUM_GRAPHS, N_GEN).sum(-1, keepdims=True) + jnp.asarray(p["bv"]))
    return mean, std, value


if __name__ == "__main__":
    x_blk, adj, params = build_problem(jax.random.PRNGKey(0))
    packed = jnp.asarray(pack_all(x_blk, adj, params))

    fwd = make_forward()
    action_mean, action_std, value = fwd(packed)
    jax.block_until_ready((action_mean, action_std, value))

    ref_mean, ref_std, ref_val = reference(x_blk, adj, params)
    # atol covers the EUP approximate-reciprocal delta vs the exact-division reference;
    # genuine structural errors are orders of magnitude larger.
    np.testing.assert_allclose(np.asarray(action_mean), np.asarray(ref_mean), rtol=2e-3, atol=1e-4)
    np.testing.assert_allclose(np.asarray(action_std), np.asarray(ref_std), rtol=2e-3, atol=1e-4)
    np.testing.assert_allclose(np.asarray(value), np.asarray(ref_val), rtol=2e-3, atol=1e-4)
    assert action_mean.shape == (NUM_GRAPHS, N_GEN)
    assert action_std.shape == (NUM_GRAPHS, N_GEN)
    assert value.shape == (NUM_GRAPHS, 1)
    print("KERNEL_OK")
</pallas_src>

<mosaic_0001>
module attributes {stable_mosaic.version = 11 : i64} {
  func.func @graphnet_kernel(%arg0: memref<520x128xf32, #tpu.memory_space<vmem>>, %arg1: memref<8x128xf32, #tpu.memory_space<vmem>>) attributes {dimension_semantics = [], scalar_prefetch = 0 : i64, scratch_operands = 0 : i64, tpu.core_type = #tpu.core_type<tc>} {
    %c0 = arith.constant 0 : index
    %c0_0 = arith.constant 0 : index
    %0 = vector.load %arg0[%c0, %c0_0] : memref<520x128xf32, #tpu.memory_space<vmem>>, vector<44x32xf32>
    %c48 = arith.constant 48 : index
    %c0_1 = arith.constant 0 : index
    %1 = vector.load %arg0[%c48, %c0_1] : memref<520x128xf32, #tpu.memory_space<vmem>>, vector<32x32xf32>
    %2 = arith.truncf %1 : vector<32x32xf32> to vector<32x32xbf16>
    %c80 = arith.constant 80 : index
    %c0_2 = arith.constant 0 : index
    %3 = vector.load %arg0[%c80, %c0_2] : memref<520x128xf32, #tpu.memory_space<vmem>>, vector<32x32xf32>
    %4 = arith.truncf %3 : vector<32x32xf32> to vector<32x32xbf16>
    %c112 = arith.constant 112 : index
    %c0_3 = arith.constant 0 : index
    %5 = vector.load %arg0[%c112, %c0_3] : memref<520x128xf32, #tpu.memory_space<vmem>>, vector<32x32xf32>
    %6 = arith.truncf %5 : vector<32x32xf32> to vector<32x32xbf16>
    %c144 = arith.constant 144 : index
    %c0_4 = arith.constant 0 : index
    %7 = vector.load %arg0[%c144, %c0_4] : memref<520x128xf32, #tpu.memory_space<vmem>>, vector<44x32xf32>
    %c192 = arith.constant 192 : index
    %c0_5 = arith.constant 0 : index
    %8 = vector.load %arg0[%c192, %c0_5] : memref<520x128xf32, #tpu.memory_space<vmem>>, vector<12x32xf32>
    %c208 = arith.constant 208 : index
    %c0_6 = arith.constant 0 : index
    %9 = vector.load %arg0[%c208, %c0_6] : memref<520x128xf32, #tpu.memory_space<vmem>>, vector<12x32xf32>
    %c224 = arith.constant 224 : index
    %c0_7 = arith.constant 0 : index
    %10 = vector.load %arg0[%c224, %c0_7] : memref<520x128xf32, #tpu.memory_space<vmem>>, vector<32x2xf32>
    %11 = arith.truncf %10 : vector<32x2xf32> to vector<32x2xbf16>
    %c256 = arith.constant 256 : index
    %c0_8 = arith.constant 0 : index
    %12 = vector.load %arg0[%c256, %c0_8] : memref<520x128xf32, #tpu.memory_space<vmem>>, vector<32x2xf32>
    %13 = arith.truncf %12 : vector<32x2xf32> to vector<32x2xbf16>
    %c288 = arith.constant 288 : index
    %c0_9 = arith.constant 0 : index
    %14 = vector.load %arg0[%c288, %c0_9] : memref<520x128xf32, #tpu.memory_space<vmem>>, vector<32x2xf32>
    %15 = arith.truncf %14 : vector<32x2xf32> to vector<32x2xbf16>
    %c320 = arith.constant 320 : index
    %c0_10 = arith.constant 0 : index
    %16 = vector.load %arg0[%c320, %c0_10] : memref<520x128xf32, #tpu.memory_space<vmem>>, vector<32x2xf32>
    %17 = arith.truncf %16 : vector<32x2xf32> to vector<32x2xbf16>
    %c352 = arith.constant 352 : index
    %c0_11 = arith.constant 0 : index
    %18 = vector.load %arg0[%c352, %c0_11] : memref<520x128xf32, #tpu.memory_space<vmem>>, vector<1x32xf32>
    %c353 = arith.constant 353 : index
    %c0_12 = arith.constant 0 : index
    %19 = vector.load %arg0[%c353, %c0_12] : memref<520x128xf32, #tpu.memory_space<vmem>>, vector<1x32xf32>
    %c354 = arith.constant 354 : index
    %c0_13 = arith.constant 0 : index
    %20 = vector.load %arg0[%c354, %c0_13] : memref<520x128xf32, #tpu.memory_space<vmem>>, vector<1x2xf32>
    %c360 = arith.constant 360 : index
    %c0_14 = arith.constant 0 : index
    %21 = vector.load %arg0[%c360, %c0_14] : memref<520x128xf32, #tpu.memory_space<vmem>>, vector<44x44xf32>
    %c408 = arith.constant 408 : index
    %c0_15 = arith.constant 0 : index
    %22 = vector.load %arg0[%c408, %c0_15] : memref<520x128xf32, #tpu.memory_space<vmem>>, vector<44x1xf32>
    %c456 = arith.constant 456 : index
    %c0_16 = arith.constant 0 : index
    %23 = vector.load %arg0[%c456, %c0_16] : memref<520x128xf32, #tpu.memory_space<vmem>>, vector<12x128xf32>
    %c472 = arith.constant 472 : index
    %c0_17 = arith.constant 0 : index
    %24 = vector.load %arg0[%c472, %c0_17] : memref<520x128xf32, #tpu.memory_space<vmem>>, vector<12x128xf32>
    %c488 = arith.constant 488 : index
    %c0_18 = arith.constant 0 : index
    %25 = vector.load %arg0[%c488, %c0_18] : memref<520x128xf32, #tpu.memory_space<vmem>>, vector<12x128xf32>
    %c504 = arith.constant 504 : index
    %c0_19 = arith.constant 0 : index
    %26 = vector.load %arg0[%c504, %c0_19] : memref<520x128xf32, #tpu.memory_space<vmem>>, vector<8x12xf32>
    %c512 = arith.constant 512 : index
    %c0_20 = arith.constant 0 : index
    %27 = vector.load %arg0[%c512, %c0_20] : memref<520x128xf32, #tpu.memory_space<vmem>>, vector<8x128xf32>
    %28 = arith.truncf %0 : vector<44x32xf32> to vector<44x32xbf16>
    %cst = arith.constant dense<0.000000e+00> : vector<44x32xf32>
    %29 = tpu.matmul %28, %2, %cst {dimension_numbers = #tpu.dot_dimension_numbers<[1], [0], [0], [1], [0, 0, 1, 1], [], []>} : vector<44x32xbf16>, vector<32x32xbf16>, vector<44x32xf32> -> vector<44x32xf32>
    %30 = arith.addf %29, %7 : vector<44x32xf32>
    %31 = arith.truncf %30 : vector<44x32xf32> to vector<44x32xbf16>
    %cst_21 = arith.constant dense<0.000000e+00> : vector<44x32xf32>
    %32 = tpu.matmul %31, %4, %cst_21 {dimension_numbers = #tpu.dot_dimension_numbers<[1], [0], [0], [1], [0, 0, 1, 1], [], []>} : vector<44x32xbf16>, vector<32x32xbf16>, vector<44x32xf32> -> vector<44x32xf32>
    %33 = arith.truncf %32 : vector<44x32xf32> to vector<44x32xbf16>
    %cst_22 = arith.constant dense<0.000000e+00> : vector<44x2xf32>
    %34 = tpu.matmul %33, %11, %cst_22 {dimension_numbers = #tpu.dot_dimension_numbers<[1], [0], [0], [1], [0, 0, 1, 1], [], []>} : vector<44x32xbf16>, vector<32x2xbf16>, vector<44x2xf32> -> vector<44x2xf32>
    %35 = vector.extract_strided_slice %34 {offsets = [0, 0], sizes = [44, 1], strides = [1, 1]} : vector<44x2xf32> to vector<44x1xf32>
    %36 = vector.extract_strided_slice %34 {offsets = [0, 1], sizes = [44, 1], strides = [1, 1]} : vector<44x2xf32> to vector<44x1xf32>
    %37 = tpu.transpose %36, [1, 0] : vector<44x1xf32> -> vector<1x44xf32>
    %38 = vector.broadcast %35 : vector<44x1xf32> to vector<44x44xf32>
    %39 = vector.broadcast %37 : vector<1x44xf32> to vector<44x44xf32>
    %40 = arith.addf %38, %39 : vector<44x44xf32>
    %cst_23 = arith.constant 0.000000e+00 : f32
    %41 = vector.broadcast %cst_23 : f32 to vector<44x44xf32>
    %42 = arith.cmpf ogt, %40, %41 : vector<44x44xf32>
    %cst_24 = arith.constant 2.000000e-01 : f32
    %43 = vector.broadcast %cst_24 : f32 to vector<44x44xf32>
    %44 = arith.mulf %43, %40 : vector<44x44xf32>
    %45 = arith.select %42, %40, %44 : vector<44x44xi1>, vector<44x44xf32>
    %46 = arith.addf %45, %21 : vector<44x44xf32>
    %cst_25 = arith.constant dense<0xFF800000> : vector<44xf32>
    %47 = vector.multi_reduction <maximumf>, %46, %cst_25 [1] : vector<44x44xf32> to vector<44xf32>
    %48 = vector.shape_cast %47 : vector<44xf32> to vector<44x1xf32>
    %49 = vector.broadcast %48 : vector<44x1xf32> to vector<44x44xf32>
    %50 = arith.subf %46, %49 : vector<44x44xf32>
    %51 = math.exp %50 : vector<44x44xf32>
    %cst_26 = arith.constant dense<0.000000e+00> : vector<44xf32>
    %52 = vector.multi_reduction <add>, %51, %cst_26 [1] : vector<44x44xf32> to vector<44xf32>
    %53 = vector.shape_cast %52 : vector<44xf32> to vector<44x1xf32>
    %54 = tpu.reciprocal %53 {approx = true} : vector<44x1xf32> -> vector<44x1xf32>
    %55 = arith.mulf %54, %22 : vector<44x1xf32>
    %56 = arith.truncf %51 : vector<44x44xf32> to vector<44x44xbf16>
    %cst_27 = arith.constant dense<0.000000e+00> : vector<44x32xf32>
    %57 = tpu.matmul %56, %33, %cst_27 {dimension_numbers = #tpu.dot_dimension_numbers<[1], [0], [0], [1], [0, 0, 1, 1], [], []>} : vector<44x44xbf16>, vector<44x32xbf16>, vector<44x32xf32> -> vector<44x32xf32>
    %58 = vector.broadcast %55 : vector<44x1xf32> to vector<44x32xf32>
    %59 = arith.mulf %57, %58 : vector<44x32xf32>
    %60 = vector.broadcast %18 : vector<1x32xf32> to vector<44x32xf32>
    %61 = arith.addf %59, %60 : vector<44x32xf32>
    %cst_28 = arith.constant 0.000000e+00 : f32
    %62 = vector.broadcast %cst_28 : f32 to vector<44x32xf32>
    %63 = arith.maximumf %61, %62 : vector<44x32xf32>
    %64 = arith.addf %63, %30 : vector<44x32xf32>
    %65 = arith.truncf %64 : vector<44x32xf32> to vector<44x32xbf16>
    %cst_29 = arith.constant dense<0.000000e+00> : vector<44x32xf32>
    %66 = tpu.matmul %65, %6, %cst_29 {dimension_numbers = #tpu.dot_dimension_numbers<[1], [0], [0], [1], [0, 0, 1, 1], [], []>} : vector<44x32xbf16>, vector<32x32xbf16>, vector<44x32xf32> -> vector<44x32xf32>
    %67 = arith.truncf %66 : vector<44x32xf32> to vector<44x32xbf16>
    %cst_30 = arith.constant dense<0.000000e+00> : vector<44x2xf32>
    %68 = tpu.matmul %67, %13, %cst_30 {dimension_numbers = #tpu.dot_dimension_numbers<[1], [0], [0], [1], [0, 0, 1, 1], [], []>} : vector<44x32xbf16>, vector<32x2xbf16>, vector<44x2xf32> -> vector<44x2xf32>
    %69 = vector.extract_strided_slice %68 {offsets = [0, 0], sizes = [44, 1], strides = [1, 1]} : vector<44x2xf32> to vector<44x1xf32>
    %70 = vector.extract_strided_slice %68 {offsets = [0, 1], sizes = [44, 1], strides = [1, 1]} : vector<44x2xf32> to vector<44x1xf32>
    %71 = tpu.transpose %70, [1, 0] : vector<44x1xf32> -> vector<1x44xf32>
    %72 = vector.broadcast %69 : vector<44x1xf32> to vector<44x44xf32>
    %73 = vector.broadcast %71 : vector<1x44xf32> to vector<44x44xf32>
    %74 = arith.addf %72, %73 : vector<44x44xf32>
    %cst_31 = arith.constant 0.000000e+00 : f32
    %75 = vector.broadcast %cst_31 : f32 to vector<44x44xf32>
    %76 = arith.cmpf ogt, %74, %75 : vector<44x44xf32>
    %cst_32 = arith.constant 2.000000e-01 : f32
    %77 = vector.broadcast %cst_32 : f32 to vector<44x44xf32>
    %78 = arith.mulf %77, %74 : vector<44x44xf32>
    %79 = arith.select %76, %74, %78 : vector<44x44xi1>, vector<44x44xf32>
    %80 = arith.addf %79, %21 : vector<44x44xf32>
    %cst_33 = arith.constant dense<0xFF800000> : vector<44xf32>
    %81 = vector.multi_reduction <maximumf>, %80, %cst_33 [1] : vector<44x44xf32> to vector<44xf32>
    %82 = vector.shape_cast %81 : vector<44xf32> to vector<44x1xf32>
    %83 = vector.broadcast %82 : vector<44x1xf32> to vector<44x44xf32>
    %84 = arith.subf %80, %83 : vector<44x44xf32>
    %85 = math.exp %84 : vector<44x44xf32>
    %cst_34 = arith.constant dense<0.000000e+00> : vector<44xf32>
    %86 = vector.multi_reduction <add>, %85, %cst_34 [1] : vector<44x44xf32> to vector<44xf32>
    %87 = vector.shape_cast %86 : vector<44xf32> to vector<44x1xf32>
    %88 = tpu.reciprocal %87 {approx = true} : vector<44x1xf32> -> vector<44x1xf32>
    %89 = arith.mulf %88, %22 : vector<44x1xf32>
    %90 = arith.truncf %85 : vector<44x44xf32> to vector<44x44xbf16>
    %cst_35 = arith.constant dense<0.000000e+00> : vector<44x32xf32>
    %91 = tpu.matmul %90, %67, %cst_35 {dimension_numbers = #tpu.dot_dimension_numbers<[1], [0], [0], [1], [0, 0, 1, 1], [], []>} : vector<44x44xbf16>, vector<44x32xbf16>, vector<44x32xf32> -> vector<44x32xf32>
    %92 = vector.broadcast %89 : vector<44x1xf32> to vector<44x32xf32>
    %93 = arith.mulf %91, %92 : vector<44x32xf32>
    %94 = vector.broadcast %19 : vector<1x32xf32> to vector<44x32xf32>
    %95 = arith.addf %93, %94 : vector<44x32xf32>
    %cst_36 = arith.constant 0.000000e+00 : f32
    %96 = vector.broadcast %cst_36 : f32 to vector<44x32xf32>
    %97 = arith.maximumf %95, %96 : vector<44x32xf32>
    %98 = arith.addf %97, %64 : vector<44x32xf32>
    %99 = arith.truncf %98 : vector<44x32xf32> to vector<44x32xbf16>
    %cst_37 = arith.constant dense<0.000000e+00> : vector<44x32xf32>
    %100 = tpu.matmul %99, %6, %cst_37 {dimension_numbers = #tpu.dot_dimension_numbers<[1], [0], [0], [1], [0, 0, 1, 1], [], []>} : vector<44x32xbf16>, vector<32x32xbf16>, vector<44x32xf32> -> vector<44x32xf32>
    %101 = arith.truncf %100 : vector<44x32xf32> to vector<44x32xbf16>
    %cst_38 = arith.constant dense<0.000000e+00> : vector<44x2xf32>
    %102 = tpu.matmul %101, %13, %cst_38 {dimension_numbers = #tpu.dot_dimension_numbers<[1], [0], [0], [1], [0, 0, 1, 1], [], []>} : vector<44x32xbf16>, vector<32x2xbf16>, vector<44x2xf32> -> vector<44x2xf32>
    %103 = vector.extract_strided_slice %102 {offsets = [0, 0], sizes = [44, 1], strides = [1, 1]} : vector<44x2xf32> to vector<44x1xf32>
    %104 = vector.extract_strided_slice %102 {offsets = [0, 1], sizes = [44, 1], strides = [1, 1]} : vector<44x2xf32> to vector<44x1xf32>
    %105 = tpu.transpose %104, [1, 0] : vector<44x1xf32> -> vector<1x44xf32>
    %106 = vector.broadcast %103 : vector<44x1xf32> to vector<44x44xf32>
    %107 = vector.broadcast %105 : vector<1x44xf32> to vector<44x44xf32>
    %108 = arith.addf %106, %107 : vector<44x44xf32>
    %cst_39 = arith.constant 0.000000e+00 : f32
    %109 = vector.broadcast %cst_39 : f32 to vector<44x44xf32>
    %110 = arith.cmpf ogt, %108, %109 : vector<44x44xf32>
    %cst_40 = arith.constant 2.000000e-01 : f32
    %111 = vector.broadcast %cst_40 : f32 to vector<44x44xf32>
    %112 = arith.mulf %111, %108 : vector<44x44xf32>
    %113 = arith.select %110, %108, %112 : vector<44x44xi1>, vector<44x44xf32>
    %114 = arith.addf %113, %21 : vector<44x44xf32>
    %cst_41 = arith.constant dense<0xFF800000> : vector<44xf32>
    %115 = vector.multi_reduction <maximumf>, %114, %cst_41 [1] : vector<44x44xf32> to vector<44xf32>
    %116 = vector.shape_cast %115 : vector<44xf32> to vector<44x1xf32>
    %117 = vector.broadcast %116 : vector<44x1xf32> to vector<44x44xf32>
    %118 = arith.subf %114, %117 : vector<44x44xf32>
    %119 = math.exp %118 : vector<44x44xf32>
    %cst_42 = arith.constant dense<0.000000e+00> : vector<44xf32>
    %120 = vector.multi_reduction <add>, %119, %cst_42 [1] : vector<44x44xf32> to vector<44xf32>
    %121 = vector.shape_cast %120 : vector<44xf32> to vector<44x1xf32>
    %122 = tpu.reciprocal %121 {approx = true} : vector<44x1xf32> -> vector<44x1xf32>
    %123 = arith.mulf %122, %22 : vector<44x1xf32>
    %124 = arith.truncf %119 : vector<44x44xf32> to vector<44x44xbf16>
    %cst_43 = arith.constant dense<0.000000e+00> : vector<44x32xf32>
    %125 = tpu.matmul %124, %101, %cst_43 {dimension_numbers = #tpu.dot_dimension_numbers<[1], [0], [0], [1], [0, 0, 1, 1], [], []>} : vector<44x44xbf16>, vector<44x32xbf16>, vector<44x32xf32> -> vector<44x32xf32>
    %126 = vector.broadcast %123 : vector<44x1xf32> to vector<44x32xf32>
    %127 = arith.mulf %125, %126 : vector<44x32xf32>
    %128 = vector.broadcast %19 : vector<1x32xf32> to vector<44x32xf32>
    %129 = arith.addf %127, %128 : vector<44x32xf32>
    %cst_44 = arith.constant 0.000000e+00 : f32
    %130 = vector.broadcast %cst_44 : f32 to vector<44x32xf32>
    %131 = arith.maximumf %129, %130 : vector<44x32xf32>
    %132 = arith.addf %131, %98 : vector<44x32xf32>
    %133 = vector.extract_strided_slice %132 {offsets = [32, 0], sizes = [12, 32], strides = [1, 1]} : vector<44x32xf32> to vector<12x32xf32>
    %134 = vector.extract_strided_slice %30 {offsets = [32, 0], sizes = [12, 32], strides = [1, 1]} : vector<44x32xf32> to vector<12x32xf32>
    %135 = arith.truncf %133 : vector<12x32xf32> to vector<12x32xbf16>
    %cst_45 = arith.constant dense<0.000000e+00> : vector<12x2xf32>
    %136 = tpu.matmul %135, %15, %cst_45 {dimension_numbers = #tpu.dot_dimension_numbers<[1], [0], [0], [1], [0, 0, 1, 1], [], []>} : vector<12x32xbf16>, vector<32x2xbf16>, vector<12x2xf32> -> vector<12x2xf32>
    %137 = arith.truncf %134 : vector<12x32xf32> to vector<12x32xbf16>
    %cst_46 = arith.constant dense<0.000000e+00> : vector<12x2xf32>
    %138 = tpu.matmul %137, %17, %cst_46 {dimension_numbers = #tpu.dot_dimension_numbers<[1], [0], [0], [1], [0, 0, 1, 1], [], []>} : vector<12x32xbf16>, vector<32x2xbf16>, vector<12x2xf32> -> vector<12x2xf32>
    %139 = arith.addf %136, %138 : vector<12x2xf32>
    %140 = vector.broadcast %20 : vector<1x2xf32> to vector<12x2xf32>
    %141 = arith.addf %139, %140 : vector<12x2xf32>
    %142 = vector.extract_strided_slice %141 {offsets = [0, 0], sizes = [12, 1], strides = [1, 1]} : vector<12x2xf32> to vector<12x1xf32>
    %143 = vector.extract_strided_slice %141 {offsets = [0, 1], sizes = [12, 1], strides = [1, 1]} : vector<12x2xf32> to vector<12x1xf32>
    %cst_47 = arith.constant 0.000000e+00 : f32
    %144 = vector.broadcast %cst_47 : f32 to vector<12x1xf32>
    %145 = arith.maximumf %143, %144 : vector<12x1xf32>
    %146 = math.absf %143 : vector<12x1xf32>
    %cst_48 = arith.constant 0.000000e+00 : f32
    %147 = vector.broadcast %cst_48 : f32 to vector<12x1xf32>
    %148 = arith.subf %147, %146 : vector<12x1xf32>
    %149 = math.exp %148 : vector<12x1xf32>
    %cst_49 = arith.constant 1.000000e+00 : f32
    %150 = vector.broadcast %cst_49 : f32 to vector<12x1xf32>
    %151 = arith.addf %150, %149 : vector<12x1xf32>
    %152 = math.log %151 : vector<12x1xf32>
    %153 = arith.addf %145, %152 : vector<12x1xf32>
    %154 = arith.mulf %133, %8 : vector<12x32xf32>
    %cst_50 = arith.constant dense<0.000000e+00> : vector<12xf32>
    %155 = vector.multi_reduction <add>, %154, %cst_50 [1] : vector<12x32xf32> to vector<12xf32>
    %156 = vector.shape_cast %155 : vector<12xf32> to vector<12x1xf32>
    %157 = arith.mulf %134, %9 : vector<12x32xf32>
    %cst_51 = arith.constant dense<0.000000e+00> : vector<12xf32>
    %158 = vector.multi_reduction <add>, %157, %cst_51 [1] : vector<12x32xf32> to vector<12xf32>
    %159 = vector.shape_cast %158 : vector<12xf32> to vector<12x1xf32>
    %160 = arith.addf %156, %159 : vector<12x1xf32>
    %161 = vector.broadcast %142 : vector<12x1xf32> to vector<12x128xf32>
    %162 = arith.mulf %161, %23 : vector<12x128xf32>
    %163 = vector.broadcast %153 : vector<12x1xf32> to vector<12x128xf32>
    %164 = arith.mulf %163, %24 : vector<12x128xf32>
    %165 = arith.addf %162, %164 : vector<12x128xf32>
    %166 = vector.broadcast %160 : vector<12x1xf32> to vector<12x128xf32>
    %167 = arith.mulf %166, %25 : vector<12x128xf32>
    %168 = arith.addf %165, %167 : vector<12x128xf32>
    %cst_52 = arith.constant dense<0.000000e+00> : vector<8x128xf32>
    %169 = tpu.matmul %26, %168, %cst_52 {dimension_numbers = #tpu.dot_dimension_numbers<[1], [0], [0], [1], [0, 0, 1, 1], [], []>} : vector<8x12xf32>, vector<12x128xf32>, vector<8x128xf32> -> vector<8x128xf32>
    %170 = arith.addf %169, %27 : vector<8x128xf32>
    %c0_53 = arith.constant 0 : index
    %c0_54 = arith.constant 0 : index
    %171 = vector.load %arg1[%c0_53, %c0_54] : memref<8x128xf32, #tpu.memory_space<vmem>>, vector<8x128xf32>
    tpu.vector_store %arg1[%c0_53, %c0_54], %170 {strides = array<i32>} : memref<8x128xf32, #tpu.memory_space<vmem>>, vector<8x128xf32>,
    return
  }
}

</mosaic_0001>

<bundles_post_ra>
// kernel: fwd.1
= control target key start
LH: loop header
LB: loop body
LE: loop exit
PB: predicated region body
PF: predicated region fallthrough
CT: control target
= control target key end

     0   :  { %6 = vsyncpa [#allocation3], 0  ;;  %s2106_s6 = smov [#allocation2]   ;;  %s2471_s0 = inlined_call_operand.hbm [shape: f32[520,128], index: 0, kind: input, shape index: {}]   ;;  %s2472_s1 = inlined_call_operand.vmem [shape: f32[8,128], index: 1, kind: output, shape index: {}]  }
   0x1   :  { %s12_s7 = sshll.u32 %s2106_s6, 4  ;;  %s2082_s10 = scalar_lea.hbm %s2471_s0, 8320  ;;  %s13_s7 = int_to_ptr.vmem [resolvable:$true] %s12_s7 }
   0x2   :  { %p2083_p0 = scmp.ne.s32.totalorder %s2471_s0, %s2082_s10  ;;  %p2086_p1 = scmp.lt.u32.totalorder %s2082_s10, %s2471_s0 }
   0x4   :  { %p2088_p2 = pnand %p2086_p1, %p2083_p0 }
   0x6   :  { %2091 = shalt.err (!%p2088_p2)
}
   0x7   :  { %s2092_s15 = scalar_lea.vmem %s13_s7, 8320  ;;  %p2097_p4 = scmp.lt.s32.totalorder %s13_s7, %s13_s7 }
   0x8   :  { %p2093_p3 = scmp.ne.s32.totalorder %s13_s7, %s2092_s15  ;;  %p2098_p5 = scmp.lt.s32.totalorder %s2092_s15, %s2092_s15 }
   0xa   :  { %p2099_p6 = por %p2098_p5, %p2097_p4 }
   0xc   :  { %p2100_p7 = pnand %p2099_p6, %p2093_p3 }
   0xe   :  { %2103 = shalt.err (!%p2100_p7)
}
   0xf   :  { %s2107_s16 = smov 128   ;;  %s2108_s17 = smov 8  }
  0x10   :  { %18 = dma.hbm_to_vmem [thread:$0]  %s2471_s0, 8320, %s13_s7, [#allocation3], %s2107_s16, %s2107_s16, %s2108_s17  }
  0x11   :  { %2104 = dma.done.wait [#allocation3], 8320  }
  0x12   :  { %2105 = vsyncadd [#allocation3], 4294958976  ;;  %v2109_v0 = vmov 0.0   ;;  %vm2110_vm0 = vmmov 0   ;;  %v29_v1 = vld [vmem:[#allocation2 + $0x30] sm:$0xff]  ;;  %v30_v2 = vld [vmem:[#allocation2 + $0x38] sm:$0xff] }
  0x13   :  { %1796 = vmatprep.subr.bf16.mxu0 %v2109_v0  ;;  %1800 = vmatprep.mubr.msk.bf16.mxu0 %vm2110_vm0, %v2109_v0  ;;  %v31_v3 = vld [vmem:[#allocation2 + $0x40] sm:$0xff]  ;;  %v33_v4 = vpack.c.bf16 %v30_v2, %v29_v1  ;;  %v32_v5 = vld [vmem:[#allocation2 + $0x48] sm:$0xff]  ;;  %vm107_vm1 = vcmask 261120   ;;  %v25_v10 = vld [vmem:[#allocation2 + $0x10] sm:$0xff]  ;;  %vm506_vm2 = vcmask 1045504   ;;  %s2112_s0 = smov 127  }
  0x14   :  { %1812 = vmatprep.subr.bf16.mxu1 %v2109_v0  ;;  %1816 = vmatprep.mubr.msk.bf16.mxu1 %vm2110_vm0, %v2109_v0  ;;  %v34_v6 = vpack.c.bf16 %v32_v5, %v31_v3  ;;  %v23_v7 = vld [vmem:[#allocation2] sm:$0xff]  ;;  %v24_v8 = vld [vmem:[#allocation2 + $0x8] sm:$0xff]  ;;  %v26_v11 = vld [vmem:[#allocation2 + $0x18] sm:$0xff]  ;;  %vm426_vm5 = vcmask 359424   ;;  %vm442_vm10 = vcmask 355328  }
  0x15   :  { %1797 = vmatpush3.bf16.msra.mxu0 %v33_v4  ;;  %v104_v9 = vpack.c.bf16 %v24_v8, %v23_v7  ;;  %v105_v12 = vpack.c.bf16 %v26_v11, %v25_v10  ;;  %v27_v13 = vld [vmem:[#allocation2 + $0x20] sm:$0xff]  ;;  %v28_v14 = vld [vmem:[#allocation2 + $0x28] sm:$0xf]  ;;  %v35_v16 = vld [vmem:[#allocation2 + $0x50] sm:$0xff]  ;;  %v2111_v8 = vmov 0  }
  0x16   :  { %1798 = vmatprep.subr.bf16.mxu0 %v2109_v0  ;;  %v106_v15 = vpack.c.bf16 %v28_v14, %v27_v13  ;;  %v36_v17 = vld [vmem:[#allocation2 + $0x58] sm:$0xff]  ;;  %v37_v19 = vld [vmem:[#allocation2 + $0x60] sm:$0xff]  ;;  %v38_v20 = vld [vmem:[#allocation2 + $0x68] sm:$0xff]  ;;  %2000 = vset.pattern.permute.xlu1 %v2111_v8 }
  0x17   :  { %v39_v18 = vpack.c.bf16 %v36_v17, %v35_v16  ;;  %v40_v21 = vpack.c.bf16 %v38_v20, %v37_v19  ;;  %v57_v22 = vld [vmem:[#allocation2 + $0xe0] sm:$0xff]  ;;  %v58_v23 = vld [vmem:[#allocation2 + $0xe8] sm:$0xff]  ;;  %v59_v24 = vld [vmem:[#allocation2 + $0xf0] sm:$0xff]  ;;  %1999 = vset.pattern.permute.xlu0 %v2111_v8 }
  0x18   :  { %v61_v25 = vpack.c.bf16 %v58_v23, %v57_v22  ;;  %v60_v26 = vld [vmem:[#allocation2 + $0xf8] sm:$0xff]  ;;  %v47_v28 = vld [vmem:[#allocation2 + $0x90] sm:$0xff]  ;;  %v49_v37 = vld [vmem:[#allocation2 + $0xa0] sm:$0xff] }
  0x19   :  { %1799 = vmatpush3.bf16.msra.mxu0 %v34_v6  ;;  %1813 = vmatpush3.bf16.msra.mxu1 %v39_v18  ;;  %v62_v27 = vpack.c.bf16 %v60_v26, %v59_v24  ;;  %v48_v30 = vld [vmem:[#allocation2 + $0x98] sm:$0xff]  ;;  %v50_v39 = vld [vmem:[#allocation2 + $0xa8] sm:$0xff]  ;;  %v51_v46 = vld [vmem:[#allocation2 + $0xb0] sm:$0xff] }
  0x1a   :  { %1828 = vmatprep.subr.bf16.mxu0 %v2109_v0  ;;  %1814 = vmatprep.subr.bf16.mxu1 %v2109_v0  ;;  %v52_v48 = vld [vmem:[#allocation2 + $0xb8] sm:$0xf]  ;;  %v2226_v8 = vld [vmem:[#allocation2 + $0x188] sm:$0xff] }
  0x1c   :  { %1801 = vmatmul.mubr.msk.bf16.vlgmr.msra.gmra.mrb[0].mxu0 %vm107_vm1, %v104_v9 }
  0x1d   :  { %1804 = vmatprep.mubr.msk.bf16.mxu0 %vm2110_vm0, %v2109_v0  ;;  %1815 = vmatpush3.bf16.msra.mxu1 %v40_v21 }
  0x1e   :  { %1844 = vmatprep.subr.bf16.mxu1 %v2109_v0  ;;  %1829 = vmatpush3.bf16.msra.mxu0 %v61_v25 }
  0x1f   :  { %1830 = vmatprep.subr.bf16.mxu0 %v2109_v0 }
  0x22   :  { %1831 = vmatpush3.bf16.msra.mxu0 %v62_v27 }
  0x23   :  { %1862 = vmatprep.subr.bf16.mxu0 %v2109_v0 }
  0x24   :  { %1805 = vmatmul.mubr.msk.bf16.gmra.mrb[4].mxu0 %vm107_vm1, %v105_v12 }
  0x25   :  { %1808 = vmatprep.mubr.msk.bf16.mxu0 %vm2110_vm0, %v2109_v0 }
  0x2c   :  { %1809 = vmatmul.mubr.msk.bf16.gmra.mrb[8].mxu0 %vm107_vm1, %v106_v15 }
  0x2d   :  { %1832 = vmatprep.mubr.msk.bf16.mxu0 %vm2110_vm0, %v2109_v0 }
  0xef   :  { %v151_v29 = vpop.f32.mrb[0].mxu0 }
  0xf0   :  { %v1802_v31 = vpop.f32.mrb[1].mxu0  ;;  %v2159_v33 = vadd.f32 %v151_v29, %v47_v28 }
  0xf1   :  { %v154_v32 = vpop.f32.mrb[2].mxu0 }
  0xf2   :  { %v2161_v34 = vadd.f32 %v154_v32, %v48_v30  ;;  %v1803_v35 = vpop.f32.mrb[3].mxu0  ;;  %v392_v30 = vlaneseq }
  0xf4   :  { %v174_v36 = vpack.c.bf16 %v2161_v34, %v2159_v33  ;;  %v393_v31 = vshrl.u32 %v392_v30, 7 }
  0xf6   :  { %1817 = vmatmul.mubr.msk.bf16.vlgmr.msra.gmra.mrb[0].mxu1 %vm107_vm1, %v174_v36  ;;  %v2208_v32 = vsub.s32 0, %v393_v31 }
  0xf7   :  { %v159_v38 = vpop.f32.mrb[4].mxu0  ;;  %1820 = vmatprep.mubr.msk.bf16.mxu1 %vm2110_vm0, %v2109_v0 }
  0xf8   :  { %v1806_v40 = vpop.f32.mrb[5].mxu0  ;;  %v2168_v42 = vadd.f32 %v159_v38, %v49_v37 }
  0xf9   :  { %v162_v41 = vpop.f32.mrb[6].mxu0 }
  0xfa   :  { %v2170_v43 = vadd.f32 %v162_v41, %v50_v39  ;;  %v1807_v44 = vpop.f32.mrb[7].mxu0  ;;  %v2211_v41 = vld [vmem:[#allocation2 + $0x168] sm:$0xff] }
  0xfc   :  { %v175_v45 = vpack.c.bf16 %v2170_v43, %v2168_v42 }
  0xfe   :  { %1821 = vmatmul.mubr.msk.bf16.gmra.mrb[4].mxu1 %vm107_vm1, %v175_v45 }
  0xff   :  { %v167_v47 = vpop.f32.mrb[8].mxu0  ;;  %1824 = vmatprep.mubr.msk.bf16.mxu1 %vm2110_vm0, %v2109_v0 }
 0x100   :  { %v2177_v49 = vadd.f32 %v167_v47, %v51_v46  ;;  %v1810_v50 = vpop.f32.mrb[9].mxu0 }
 0x101   :  { %v170_v51 = vpop.f32.mrb[10].mxu0 }
 0x102   :  { %v2179_v52 = vadd.f32 %v170_v51, %v52_v48  ;;  %v1811_v53 = vpop.f32.mrb[11].mxu0  ;;  %v2213_v48 = vld [vmem:[#allocation2 + $0x170] sm:$0xff] }
 0x104   :  { %v2183_v54 = vpack.c.bf16 %v2179_v52, %v2177_v49 }
 0x106   :  { %1825 = vmatmul.mubr.msk.bf16.gmra.mrb[8].mxu1 %vm107_vm1, %v2183_v54 }
 0x107   :  { %1850 = vmatprep.mubr.msk.bf16.mxu1 %vm2110_vm0, %v2109_v0 }
 0x1c9   :  { %v220_v55 = vpop.f32.mrb[0].mxu1 }
 0x1ca   :  { %v1818_v56 = vpop.f32.mrb[1].mxu1 }
 0x1cb   :  { %v223_v57 = vpop.f32.mrb[2].mxu1 }
 0x1cc   :  { %v243_v58 = vpack.c.bf16 %v223_v57, %v220_v55  ;;  %v1819_v59 = vpop.f32.mrb[3].mxu1 }
 0x1ce   :  { %1833 = vmatmul.mubr.msk.bf16.vlgmr.msra.gmra.mrb[12].mxu0 %vm107_vm1, %v243_v58  ;;  %1845 = vmatpush3.bf16.msra.mxu1 %v243_v58  ;;  %v2218_v58 = vld [vmem:[#allocation2 + $0x178] sm:$0xff] }
 0x1cf   :  { %1836 = vmatprep.mubr.msk.bf16.mxu0 %vm2110_vm0, %v2109_v0  ;;  %1846 = vmatprep.subr.bf16.mxu1 %v2109_v0 }
 0x1d1   :  { %v228_v60 = vpop.f32.mrb[4].mxu1 }
 0x1d2   :  { %v1822_v61 = vpop.f32.mrb[5].mxu1 }
 0x1d3   :  { %v231_v62 = vpop.f32.mrb[6].mxu1 }
 0x1d4   :  { %v244_v63 = vpack.c.bf16 %v231_v62, %v228_v60  ;;  %v1823_v1 = vpop.f32.mrb[7].mxu1 }
 0x1d6   :  { %1837 = vmatmul.mubr.msk.bf16.gmra.mrb[16].mxu0 %vm107_vm1, %v244_v63  ;;  %1847 = vmatpush3.bf16.msra.mxu1 %v244_v63 }
 0x1d7   :  { %1840 = vmatprep.mubr.msk.bf16.mxu0 %vm2110_vm0, %v2109_v0  ;;  %1848 = vmatprep.subr.bf16.mxu1 %v2109_v0 }
 0x1d9   :  { %v236_v2 = vpop.f32.mrb[8].mxu1 }
 0x1da   :  { %v1826_v3 = vpop.f32.mrb[9].mxu1 }
 0x1db   :  { %v239_v4 = vpop.f32.mrb[10].mxu1 }
 0x1dc   :  { %v245_v5 = vpack.c.bf16 %v239_v4, %v236_v2  ;;  %v1827_v6 = vpop.f32.mrb[11].mxu1  ;;  %v2222_v2 = vld [vmem:[#allocation2 + $0x180] sm:$0xff] }
 0x1de   :  { %v507_v7 = vsel %vm506_vm2, %v245_v5, 0  ;;  %1841 = vmatmul.mubr.msk.bf16.gmra.mrb[20].mxu0 %vm107_vm1, %v245_v5 }
 0x1df   :  { %1849 = vmatpush3.bf16.msra.mxu1 %v507_v7  ;;  %1866 = vmatprep.mubr.msk.bf16.mxu0 %vm2110_vm0, %v2109_v0 }
 0x1e0   :  { %1878 = vmatprep.subr.bf16.mxu1 %v2109_v0 }
 0x2a1   :  { %v289_v9 = vpop.f32.mrb[12].mxu0 }
 0x2a2   :  { %318 = vrot.lane.b32.xlu0 %v289_v9, %s2112_s0  ;;  %v1834_v10 = vpop.f32.mrb[13].mxu0 }
 0x2a3   :  { %v292_v11 = vpop.f32.mrb[14].mxu0 }
 0x2a4   :  { %v1835_v12 = vpop.f32.mrb[15].mxu0 }
 0x2a6   :  { %320 = vrot.lane.b32.xlu0 %v292_v11, %s2112_s0 }
 0x2a9   :  { %v297_v13 = vpop.f32.mrb[16].mxu0 }
 0x2aa   :  { %322 = vrot.lane.b32.xlu1 %v297_v13, %s2112_s0  ;;  %v1838_v14 = vpop.f32.mrb[17].mxu0 }
 0x2ab   :  { %v300_v15 = vpop.f32.mrb[18].mxu0 }
 0x2ac   :  { %v1839_v16 = vpop.f32.mrb[19].mxu0 }
 0x2ae   :  { %324 = vrot.lane.b32.xlu1 %v300_v15, %s2112_s0 }
 0x2b1   :  { %v305_v17 = vpop.f32.mrb[20].mxu0 }
 0x2b2   :  { %373 = vperm.xlu1 %2000, %v292_v11   ;;  %326 = vrot.lane.b32.xlu0 %v305_v17, %s2112_s0  ;;  %v1842_v18 = vpop.f32.mrb[21].mxu0 }
 0x2b3   :  { %v308_v19 = vpop.f32.mrb[22].mxu0 }
 0x2b4   :  { %v1843_v20 = vpop.f32.mrb[23].mxu0 }
 0x2b6   :  { %377 = vperm.xlu1 %2000, %v297_v13   ;;  %369 = vperm.xlu0 %1999, %v289_v9   ;;  %v2230_v13 = vld [vmem:[#allocation2 + $0x190] sm:$0xf] }
 0x2ba   :  { %385 = vperm.xlu1 %2000, %v305_v17   ;;  %381 = vperm.xlu0 %1999, %v300_v15  }
 0x2be   :  { %389 = vperm.xlu0 %1999, %v308_v19   ;;  %328 = vrot.lane.b32.xlu1 %v308_v19, %s2112_s0 }
 0x314   :  { %v319_v21 = vpop.permute.xlu0 %318 }
 0x315   :  { %336 = vxpose.xlu1.b32.start [1/6] (short) (narrow) %v319_v21, 8 }
 0x318   :  { %v321_v22 = vpop.permute.xlu0 %320 }
 0x319   :  { %337 = vxpose.xlu1.b32.cont [2/6] (short) (narrow) %v321_v22, 8 }
 0x31c   :  { %v323_v23 = vpop.permute.xlu1 %322 }
 0x31d   :  { %338 = vxpose.xlu1.b32.cont [3/6] (short) (narrow) %v323_v23, 8 }
 0x320   :  { %v325_v24 = vpop.permute.xlu1 %324 }
 0x321   :  { %339 = vxpose.xlu1.b32.cont [4/6] (short) (narrow) %v325_v24, 8 }
 0x324   :  { %v327_v25 = vpop.permute.xlu0 %326 }
 0x325   :  { %340 = vxpose.xlu1.b32.cont [5/6] (short) (narrow) %v327_v25, 8 }
 0x331   :  { %v374_v26 = vpop.permute.xlu1 %373 }
 0x335   :  { %v378_v27 = vpop.permute.xlu1 %377  ;;  %v370_v35 = vpop.permute.xlu0 %369 }
 0x339   :  { %v386_v28 = vpop.permute.xlu1 %385  ;;  %v382_v46 = vpop.permute.xlu0 %381 }
 0x33d   :  { %v329_v29 = vpop.permute.xlu1 %328  ;;  %v390_v62 = vpop.permute.xlu0 %389 }
 0x33e   :  { %341 = vxpose.xlu1.b32.end [6/6] (short) (narrow) %v329_v29, 8 }
 0x3aa   :  { %v352_v36 = vpop.trf.xlu1 }
 0x3ab   :  { %v395_v37 = vrot.slane %v352_v36, %v2208_v32 }
 0x3ad   :  { %v396_v38 = vadd.f32 %v395_v37, %v370_v35  ;;  %v397_v39 = vadd.f32 %v395_v37, %v374_v26  ;;  %v398_v40 = vadd.f32 %v395_v37, %v378_v27  ;;  %v399_v53 = vadd.f32 %v395_v37, %v382_v46 }
 0x3ae   :  { %v400_v61 = vadd.f32 %v395_v37, %v386_v28  ;;  %v401_v5 = vadd.f32 %v395_v37, %v390_v62  ;;  %v41_v62 = vld [vmem:[#allocation2 + $0x70] sm:$0xff] }
 0x3af   :  { %vm402_vm3 = vcmp.gt.f32.partialorder %v396_v38, 0.0  ;;  %v408_v44 = vmul.f32 0.2, %v396_v38  ;;  %vm403_vm4 = vcmp.gt.f32.partialorder %v397_v39, 0.0  ;;  %v409_v45 = vmul.f32 0.2, %v397_v39 }
 0x3b0   :  { %v410_v51 = vmul.f32 0.2, %v398_v40  ;;  %vm404_vm6 = vcmp.gt.f32.partialorder %v398_v40, 0.0  ;;  %v411_v60 = vmul.f32 0.2, %v399_v53  ;;  %vm405_vm7 = vcmp.gt.f32.partialorder %v399_v53, 0.0 }
 0x3b1   :  { %v414_v47 = vsel %vm402_vm3, %v396_v38, %v408_v44  ;;  %v415_v50 = vsel %vm403_vm4, %v397_v39, %v409_v45  ;;  %v412_v4 = vmul.f32 0.2, %v400_v61  ;;  %vm406_vm8 = vcmp.gt.f32.partialorder %v400_v61, 0.0 }
 0x3b2   :  { %v420_v55 = vadd.f32 %v414_v47, %v2211_v41  ;;  %v421_v57 = vadd.f32 %v415_v50, %v2213_v48  ;;  %v416_v59 = vsel %vm404_vm6, %v398_v40, %v410_v51  ;;  %v417_v3 = vsel %vm405_vm7, %v399_v53, %v411_v60 }
 0x3b3   :  { %v422_v1 = vadd.f32 %v416_v59, %v2218_v58  ;;  %v423_v7 = vadd.f32 %v417_v3, %v2222_v2  ;;  %v418_v9 = vsel %vm406_vm8, %v400_v61, %v412_v4  ;;  %v413_v10 = vmul.f32 0.2, %v401_v5 }
 0x3b4   :  { %v427_v56 = vsel %vm426_vm5, %v420_v55, -inf  ;;  %v430_v63 = vsel %vm426_vm5, %v421_v57, -inf  ;;  %vm407_vm9 = vcmp.gt.f32.partialorder %v401_v5, 0.0  ;;  %v424_v12 = vadd.f32 %v418_v9, %v2226_v8 }
 0x3b5   :  { %428 = vmax.xlane.f32.xlu0 %v427_v56  ;;  %v433_v6 = vsel %vm426_vm5, %v422_v1, -inf  ;;  %v436_v11 = vsel %vm426_vm5, %v423_v7, -inf  ;;  %v419_v14 = vsel %vm407_vm9, %v401_v5, %v413_v10 }
 0x3b6   :  { %v439_v15 = vsel %vm426_vm5, %v424_v12, -inf  ;;  %v425_v16 = vadd.f32 %v419_v14, %v2230_v13 }
 0x3b8   :  { %v443_v17 = vsel %vm442_vm10, %v425_v16, -inf }
 0x3b9   :  { %431 = vmax.xlane.f32.xlu0 %v430_v63  ;;  %v42_v63 = vld [vmem:[#allocation2 + $0x78] sm:$0xff] }
 0x3bd   :  { %434 = vmax.xlane.f32.xlu0 %v433_v6  ;;  %v2254_v6 = vld [vmem:[#allocation2 + $0x198] sm:$0xff] }
 0x3c1   :  { %437 = vmax.xlane.f32.xlu0 %v436_v11  ;;  %v2257_v11 = vld [vmem:[#allocation2 + $0x1a0] sm:$0xff] }
 0x3c5   :  { %440 = vmax.xlane.f32.xlu0 %v439_v15 }
 0x3c9   :  { %444 = vmax.xlane.f32.xlu0 %v443_v17 }
 0x442   :  { %v429_v18 = vpop.xlane.xlu0 %428 }
 0x443   :  { %v446_v19 = vsub.f32 %v420_v55, %v429_v18 }
 0x445   :  { %v452_v20 = vmul.f32 1.442695, %v446_v19 }
 0x446   :  { %v432_v21 = vpop.xlane.xlu0 %431 }
 0x447   :  { %2003 = vpow2.f32 %v452_v20  ;;  %v447_v22 = vsub.f32 %v421_v57, %v432_v21  ;;  %v2263_v20 = vld [vmem:[#allocation2 + $0x1b0] sm:$0xff] }
 0x449   :  { %v454_v23 = vmul.f32 1.442695, %v447_v22 }
 0x44a   :  { %v435_v24 = vpop.xlane.xlu0 %434 }
 0x44b   :  { %2005 = vpow2.f32 %v454_v23  ;;  %v448_v25 = vsub.f32 %v422_v1, %v435_v24  ;;  %v2250_v1 = vpack.c.bf16 %v42_v63, %v41_v62  ;;  %v2266_v23 = vld [vmem:[#allocation2 + $0x1b8] sm:$0xff]  ;;  %v43_v24 = vld [vmem:[#allocation2 + $0x80] sm:$0xff] }
 0x44d   :  { %v456_v26 = vmul.f32 1.442695, %v448_v25  ;;  %1863 = vmatpush3.bf16.msra.mxu0 %v2250_v1  ;;  %v44_v25 = vld [vmem:[#allocation2 + $0x88] sm:$0xff] }
 0x44e   :  { %v438_v27 = vpop.xlane.xlu0 %437  ;;  %1864 = vmatprep.subr.bf16.mxu0 %v2109_v0 }
 0x44f   :  { %2007 = vpow2.f32 %v456_v26  ;;  %v449_v28 = vsub.f32 %v423_v7, %v438_v27  ;;  %v2268_v27 = vpack.c.bf16 %v44_v25, %v43_v24 }
 0x451   :  { %v2004_v29 = vpop.eup %2003  ;;  %v458_v30 = vmul.f32 1.442695, %v449_v28  ;;  %1865 = vmatpush3.bf16.msra.mxu0 %v2268_v27 }
 0x452   :  { %v441_v31 = vpop.xlane.xlu0 %440  ;;  %v464_v35 = vsel %vm426_vm5, %v2004_v29, 0.0  ;;  %1894 = vmatprep.subr.bf16.mxu0 %v2109_v0 }
 0x453   :  { %2009 = vpow2.f32 %v458_v30  ;;  %v450_v36 = vsub.f32 %v424_v12, %v441_v31  ;;  %465 = vadd.xlane.f32.xlu0 %v464_v35  ;;  %v63_v35 = vld [vmem:[#allocation2 + $0x100] sm:$0xff] }
 0x455   :  { %v2006_v37 = vpop.eup %2005  ;;  %v460_v38 = vmul.f32 1.442695, %v450_v36  ;;  %v64_v36 = vld [vmem:[#allocation2 + $0x108] sm:$0xff] }
 0x456   :  { %v494_v39 = vpack.c.bf16 %v2006_v37, %v2004_v29  ;;  %v445_v40 = vpop.xlane.xlu0 %444  ;;  %v467_v44 = vsel %vm426_vm5, %v2006_v37, 0.0  ;;  %v2271_v29 = vld [vmem:[#allocation2 + $0x1c0] sm:$0xf]  ;;  %v65_v37 = vld [vmem:[#allocation2 + $0x110] sm:$0xff] }
 0x457   :  { %2011 = vpow2.f32 %v460_v38  ;;  %v451_v45 = vsub.f32 %v425_v16, %v445_v40  ;;  %468 = vadd.xlane.f32.xlu0 %v467_v44  ;;  %v2260_v16 = vld [vmem:[#allocation2 + $0x1a8] sm:$0xff]  ;;  %v2276_v38 = vpack.c.bf16 %v64_v36, %v63_v35 }
 0x458   :  { %1851 = vmatmul.mubr.msk.bf16.vlgmr.msra.gmra.mrb[12].mxu1 %vm426_vm5, %v494_v39  ;;  %v66_v39 = vld [vmem:[#allocation2 + $0x118] sm:$0xff] }
 0x459   :  { %v2008_v46 = vpop.eup %2007  ;;  %v462_v47 = vmul.f32 1.442695, %v451_v45  ;;  %1854 = vmatprep.mubr.msk.bf16.mxu1 %vm2110_vm0, %v2109_v0  ;;  %1879 = vmatpush3.bf16.msra.mxu1 %v2276_v38  ;;  %v2279_v40 = vpack.c.bf16 %v66_v39, %v65_v37 }
 0x45a   :  { %v470_v50 = vsel %vm426_vm5, %v2008_v46, 0.0  ;;  %1880 = vmatprep.subr.bf16.mxu1 %v2109_v0 }
 0x45b   :  { %2013 = vpow2.f32 %v462_v47  ;;  %471 = vadd.xlane.f32.xlu1 %v470_v50 }
 0x45d   :  { %v2010_v51 = vpop.eup %2009  ;;  %1881 = vmatpush3.bf16.msra.mxu1 %v2279_v40 }
 0x45e   :  { %v473_v53 = vsel %vm426_vm5, %v2010_v51, 0.0  ;;  %v495_v55 = vpack.c.bf16 %v2010_v51, %v2008_v46  ;;  %1912 = vmatprep.subr.bf16.mxu1 %v2109_v0 }
 0x45f   :  { %474 = vadd.xlane.f32.xlu0 %v473_v53 }
 0x460   :  { %1855 = vmatmul.mubr.msk.bf16.gmra.mrb[16].mxu1 %vm426_vm5, %v495_v55 }
 0x461   :  { %v2012_v56 = vpop.eup %2011  ;;  %1858 = vmatprep.mubr.msk.bf16.mxu1 %vm2110_vm0, %v2109_v0 }
 0x462   :  { %v476_v57 = vsel %vm426_vm5, %v2012_v56, 0.0 }
 0x463   :  { %477 = vadd.xlane.f32.xlu0 %v476_v57 }
 0x465   :  { %v2014_v59 = vpop.eup %2013 }
 0x466   :  { %v479_v60 = vsel %vm442_vm10, %v2014_v59, 0.0  ;;  %v496_v61 = vpack.c.bf16 %v2014_v59, %v2012_v56 }
 0x467   :  { %480 = vadd.xlane.f32.xlu0 %v479_v60 }
 0x468   :  { %1859 = vmatmul.mubr.msk.bf16.gmra.mrb[20].mxu1 %vm426_vm5, %v496_v61  ;;  %v1709_v61 = vld [vmem:[#allocation2 + $0x160] ss:$0 sm:$0xff] }
 0x469   :  { %1882 = vmatprep.mubr.msk.bf16.mxu1 %vm2110_vm0, %v2109_v0 }
 0x4e0   :  { %v466_v3 = vpop.xlane.xlu0 %465 }
 0x4e1   :  { %2015 = vrcp.f32 %v466_v3 }
 0x4e4   :  { %v469_v4 = vpop.xlane.xlu0 %468 }
 0x4e5   :  { %2017 = vrcp.f32 %v469_v4 }
 0x4e8   :  { %v472_v5 = vpop.xlane.xlu1 %471 }
 0x4e9   :  { %2019 = vrcp.f32 %v472_v5 }
 0x4eb   :  { %v2016_v7 = vpop.eup %2015 }
 0x4ec   :  { %v475_v9 = vpop.xlane.xlu0 %474  ;;  %v488_v10 = vmul.f32 %v2016_v7, %v2254_v6 }
 0x4ed   :  { %2021 = vrcp.f32 %v475_v9 }
 0x4ee   :  { %568 = vperm.xlu0 %1999, %v488_v10  }
 0x4ef   :  { %v2018_v12 = vpop.eup %2017 }
 0x4f0   :  { %v478_v14 = vpop.xlane.xlu0 %477  ;;  %v489_v15 = vmul.f32 %v2018_v12, %v2257_v11 }
 0x4f1   :  { %2023 = vrcp.f32 %v478_v14 }
 0x4f2   :  { %573 = vperm.xlu0 %1999, %v489_v15  }
 0x4f3   :  { %v2020_v17 = vpop.eup %2019 }
 0x4f4   :  { %v481_v18 = vpop.xlane.xlu0 %480  ;;  %v490_v19 = vmul.f32 %v2020_v17, %v2260_v16 }
 0x4f5   :  { %2025 = vrcp.f32 %v481_v18 }
 0x4f6   :  { %578 = vperm.xlu1 %2000, %v490_v19  }
 0x4f7   :  { %v2022_v21 = vpop.eup %2021 }
 0x4f8   :  { %v491_v22 = vmul.f32 %v2022_v21, %v2263_v20 }
 0x4fa   :  { %583 = vperm.xlu0 %1999, %v491_v22  }
 0x4fb   :  { %v2024_v26 = vpop.eup %2023 }
 0x4fc   :  { %v492_v28 = vmul.f32 %v2024_v26, %v2266_v23 }
 0x4fe   :  { %588 = vperm.xlu0 %1999, %v492_v28  }
 0x4ff   :  { %v2026_v30 = vpop.eup %2025 }
 0x500   :  { %v493_v31 = vmul.f32 %v2026_v30, %v2271_v29 }
 0x502   :  { %593 = vperm.xlu0 %1999, %v493_v31  }
 0x52b   :  { %v543_v44 = vpop.f32.mrb[12].mxu1 }
 0x52c   :  { %v1852_v45 = vpop.f32.mrb[13].mxu1 }
 0x52d   :  { %v546_v46 = vpop.f32.mrb[14].mxu1 }
 0x52e   :  { %v1853_v47 = vpop.f32.mrb[15].mxu1 }
 0x533   :  { %v551_v50 = vpop.f32.mrb[16].mxu1 }
 0x534   :  { %v1856_v51 = vpop.f32.mrb[17].mxu1 }
 0x535   :  { %v554_v53 = vpop.f32.mrb[18].mxu1 }
 0x536   :  { %v1857_v55 = vpop.f32.mrb[19].mxu1 }
 0x53b   :  { %v559_v56 = vpop.f32.mrb[20].mxu1 }
 0x53c   :  { %v1860_v57 = vpop.f32.mrb[21].mxu1 }
 0x53d   :  { %v562_v59 = vpop.f32.mrb[22].mxu1 }
 0x53e   :  { %v1861_v60 = vpop.f32.mrb[23].mxu1 }
 0x56d   :  { %v569_v62 = vpop.permute.xlu0 %568 }
 0x56e   :  { %v596_v63 = vmul.f32 %v569_v62, %v543_v44 }
 0x570   :  { %v606_v3 = vadd.f32 %v1709_v61, %v596_v63 }
 0x571   :  { %v574_v4 = vpop.permute.xlu0 %573 }
 0x572   :  { %v597_v5 = vmul.f32 %v574_v4, %v546_v46  ;;  %v612_v7 = vmax.f32 %v606_v3, 0.0 }
 0x574   :  { %v607_v9 = vadd.f32 %v1709_v61, %v597_v5  ;;  %v2285_v15 = vadd.f32 %v612_v7, %v2159_v33 }
 0x575   :  { %v579_v10 = vpop.permute.xlu1 %578 }
 0x576   :  { %v613_v12 = vmax.f32 %v607_v9, 0.0  ;;  %v598_v14 = vmul.f32 %v579_v10, %v551_v50 }
 0x578   :  { %v2288_v17 = vadd.f32 %v613_v12, %v2161_v34  ;;  %v608_v18 = vadd.f32 %v1709_v61, %v598_v14 }
 0x579   :  { %v584_v19 = vpop.permute.xlu0 %583 }
 0x57a   :  { %v624_v21 = vpack.c.bf16 %v2288_v17, %v2285_v15  ;;  %v599_v22 = vmul.f32 %v584_v19, %v554_v53  ;;  %v614_v24 = vmax.f32 %v608_v18, 0.0 }
 0x57c   :  { %v609_v25 = vadd.f32 %v1709_v61, %v599_v22  ;;  %1867 = vmatmul.mubr.msk.bf16.vlgmr.msra.gmra.mrb[24].mxu0 %vm107_vm1, %v624_v21  ;;  %v2296_v30 = vadd.f32 %v614_v24, %v2168_v42 }
 0x57d   :  { %v589_v26 = vpop.permute.xlu0 %588  ;;  %1870 = vmatprep.mubr.msk.bf16.mxu0 %vm2110_vm0, %v2109_v0 }
 0x57e   :  { %v615_v28 = vmax.f32 %v609_v25, 0.0  ;;  %v600_v33 = vmul.f32 %v589_v26, %v559_v56 }
 0x580   :  { %v2299_v34 = vadd.f32 %v615_v28, %v2170_v43  ;;  %v610_v31 = vadd.f32 %v1709_v61, %v600_v33 }
 0x581   :  { %v594_v35 = vpop.permute.xlu0 %593 }
 0x582   :  { %v625_v36 = vpack.c.bf16 %v2299_v34, %v2296_v30  ;;  %v601_v37 = vmul.f32 %v594_v35, %v562_v59  ;;  %v616_v39 = vmax.f32 %v610_v31, 0.0 }
 0x584   :  { %v611_v44 = vadd.f32 %v1709_v61, %v601_v37  ;;  %1871 = vmatmul.mubr.msk.bf16.gmra.mrb[28].mxu0 %vm107_vm1, %v625_v36  ;;  %v2307_v42 = vadd.f32 %v616_v39, %v2177_v49 }
 0x585   :  { %1874 = vmatprep.mubr.msk.bf16.mxu0 %vm2110_vm0, %v2109_v0 }
 0x586   :  { %v617_v45 = vmax.f32 %v611_v44, 0.0 }
 0x588   :  { %v2310_v43 = vadd.f32 %v617_v45, %v2179_v52 }
 0x58a   :  { %v626_v46 = vpack.c.bf16 %v2310_v43, %v2307_v42 }
 0x58c   :  { %1875 = vmatmul.mubr.msk.bf16.gmra.mrb[32].mxu0 %vm107_vm1, %v626_v46 }
 0x58d   :  { %1900 = vmatprep.mubr.msk.bf16.mxu0 %vm2110_vm0, %v2109_v0 }
 0x64f   :  { %v670_v47 = vpop.f32.mrb[24].mxu0 }
 0x650   :  { %v1868_v50 = vpop.f32.mrb[25].mxu0 }
 0x651   :  { %v673_v51 = vpop.f32.mrb[26].mxu0 }
 0x652   :  { %v693_v53 = vpack.c.bf16 %v673_v51, %v670_v47  ;;  %v1869_v55 = vpop.f32.mrb[27].mxu0 }
 0x654   :  { %1883 = vmatmul.mubr.msk.bf16.vlgmr.msra.gmra.mrb[24].mxu1 %vm107_vm1, %v693_v53  ;;  %1895 = vmatpush3.bf16.msra.mxu0 %v693_v53 }
 0x655   :  { %1886 = vmatprep.mubr.msk.bf16.mxu1 %vm2110_vm0, %v2109_v0  ;;  %1896 = vmatprep.subr.bf16.mxu0 %v2109_v0 }
 0x656   :  { %1913 = vmatpush3.bf16.msra.mxu1 %v2250_v1 }
 0x657   :  { %v678_v56 = vpop.f32.mrb[28].mxu0  ;;  %1914 = vmatprep.subr.bf16.mxu1 %v2109_v0 }
 0x658   :  { %v1872_v57 = vpop.f32.mrb[29].mxu0 }
 0x659   :  { %v681_v59 = vpop.f32.mrb[30].mxu0 }
 0x65a   :  { %v694_v60 = vpack.c.bf16 %v681_v59, %v678_v56  ;;  %v1873_v61 = vpop.f32.mrb[31].mxu0  ;;  %1915 = vmatpush3.bf16.msra.mxu1 %v2268_v27 }
 0x65b   :  { %1944 = vmatprep.subr.bf16.mxu1 %v2109_v0 }
 0x65c   :  { %1887 = vmatmul.mubr.msk.bf16.gmra.mrb[28].mxu1 %vm107_vm1, %v694_v60  ;;  %1897 = vmatpush3.bf16.msra.mxu0 %v694_v60 }
 0x65d   :  { %1890 = vmatprep.mubr.msk.bf16.mxu1 %vm2110_vm0, %v2109_v0  ;;  %1898 = vmatprep.subr.bf16.mxu0 %v2109_v0 }
 0x65f   :  { %v686_v1 = vpop.f32.mrb[32].mxu0 }
 0x660   :  { %v1876_v62 = vpop.f32.mrb[33].mxu0 }
 0x661   :  { %v689_v63 = vpop.f32.mrb[34].mxu0 }
 0x662   :  { %v695_v3 = vpack.c.bf16 %v689_v63, %v686_v1  ;;  %v1877_v4 = vpop.f32.mrb[35].mxu0 }
 0x664   :  { %v954_v5 = vsel %vm506_vm2, %v695_v3, 0  ;;  %1891 = vmatmul.mubr.msk.bf16.gmra.mrb[32].mxu1 %vm107_vm1, %v695_v3 }
 0x665   :  { %1899 = vmatpush3.bf16.msra.mxu0 %v954_v5  ;;  %1916 = vmatprep.mubr.msk.bf16.mxu1 %vm2110_vm0, %v2109_v0 }
 0x666   :  { %1928 = vmatprep.subr.bf16.mxu0 %v2109_v0 }
 0x727   :  { %v739_v27 = vpop.f32.mrb[24].mxu1 }
 0x728   :  { %768 = vrot.lane.b32.xlu0 %v739_v27, %s2112_s0  ;;  %v1884_v7 = vpop.f32.mrb[25].mxu1 }
 0x729   :  { %v742_v9 = vpop.f32.mrb[26].mxu1 }
 0x72a   :  { %v1885_v10 = vpop.f32.mrb[27].mxu1 }
 0x72c   :  { %770 = vrot.lane.b32.xlu0 %v742_v9, %s2112_s0 }
 0x72f   :  { %v747_v12 = vpop.f32.mrb[28].mxu1 }
 0x730   :  { %772 = vrot.lane.b32.xlu1 %v747_v12, %s2112_s0  ;;  %v1888_v14 = vpop.f32.mrb[29].mxu1 }
 0x731   :  { %v750_v18 = vpop.f32.mrb[30].mxu1 }
 0x732   :  { %774 = vrot.lane.b32.xlu0 %v750_v18, %s2112_s0  ;;  %v1889_v19 = vpop.f32.mrb[31].mxu1 }
 0x737   :  { %v755_v21 = vpop.f32.mrb[32].mxu1 }
 0x738   :  { %776 = vrot.lane.b32.xlu1 %v755_v21, %s2112_s0  ;;  %v1892_v22 = vpop.f32.mrb[33].mxu1 }
 0x739   :  { %v758_v24 = vpop.f32.mrb[34].mxu1 }
 0x73a   :  { %778 = vrot.lane.b32.xlu0 %v758_v24, %s2112_s0  ;;  %v1893_v25 = vpop.f32.mrb[35].mxu1 }
 0x73c   :  { %819 = vperm.xlu1 %2000, %v739_v27  }
 0x73e   :  { %823 = vperm.xlu0 %1999, %v742_v9  }
 0x740   :  { %827 = vperm.xlu1 %2000, %v747_v12  }
 0x742   :  { %831 = vperm.xlu0 %1999, %v750_v18  }
 0x744   :  { %835 = vperm.xlu1 %2000, %v755_v21  }
 0x746   :  { %839 = vperm.xlu0 %1999, %v758_v24  }
 0x79a   :  { %v769_v26 = vpop.permute.xlu0 %768 }
 0x79b   :  { %786 = vxpose.xlu1.b32.start [1/6] (short) (narrow) %v769_v26, 8 }
 0x79e   :  { %v771_v28 = vpop.permute.xlu0 %770 }
 0x79f   :  { %787 = vxpose.xlu1.b32.cont [2/6] (short) (narrow) %v771_v28, 8 }
 0x7a2   :  { %v773_v33 = vpop.permute.xlu1 %772 }
 0x7a3   :  { %788 = vxpose.xlu1.b32.cont [3/6] (short) (narrow) %v773_v33, 8 }
 0x7a4   :  { %v775_v31 = vpop.permute.xlu0 %774 }
 0x7a7   :  { %789 = vxpose.xlu1.b32.cont [4/6] (short) (narrow) %v775_v31, 8 }
 0x7aa   :  { %v777_v35 = vpop.permute.xlu1 %776 }
 0x7ab   :  { %790 = vxpose.xlu1.b32.cont [5/6] (short) (narrow) %v777_v35, 8 }
 0x7ac   :  { %v779_v36 = vpop.permute.xlu0 %778 }
 0x7af   :  { %791 = vxpose.xlu1.b32.end [6/6] (short) (narrow) %v779_v36, 8 }
 0x7bb   :  { %v820_v37 = vpop.permute.xlu1 %819 }
 0x7bd   :  { %v824_v45 = vpop.permute.xlu0 %823 }
 0x7bf   :  { %v828_v39 = vpop.permute.xlu1 %827 }
 0x7c1   :  { %v832_v57 = vpop.permute.xlu0 %831 }
 0x7c3   :  { %v836_v44 = vpop.permute.xlu1 %835 }
 0x7c5   :  { %v840_v7 = vpop.permute.xlu0 %839 }
 0x81b   :  { %v802_v46 = vpop.trf.xlu1 }
 0x81c   :  { %v845_v47 = vrot.slane %v802_v46, %v2208_v32 }
 0x81e   :  { %v846_v50 = vadd.f32 %v845_v47, %v820_v37  ;;  %v847_v51 = vadd.f32 %v845_v47, %v824_v45  ;;  %v848_v53 = vadd.f32 %v845_v47, %v828_v39  ;;  %v849_v1 = vadd.f32 %v845_v47, %v832_v57 }
 0x81f   :  { %v850_v27 = vadd.f32 %v845_v47, %v836_v44  ;;  %v851_v18 = vadd.f32 %v845_v47, %v840_v7 }
 0x820   :  { %vm852_vm11 = vcmp.gt.f32.partialorder %v846_v50, 0.0  ;;  %v858_v55 = vmul.f32 0.2, %v846_v50  ;;  %vm853_vm12 = vcmp.gt.f32.partialorder %v847_v51, 0.0  ;;  %v859_v56 = vmul.f32 0.2, %v847_v51 }
 0x821   :  { %v860_v61 = vmul.f32 0.2, %v848_v53  ;;  %vm854_vm13 = vcmp.gt.f32.partialorder %v848_v53, 0.0  ;;  %v861_v5 = vmul.f32 0.2, %v849_v1  ;;  %vm855_vm14 = vcmp.gt.f32.partialorder %v849_v1, 0.0 }
 0x822   :  { %v864_v59 = vsel %vm852_vm11, %v846_v50, %v858_v55  ;;  %v865_v60 = vsel %vm853_vm12, %v847_v51, %v859_v56  ;;  %v862_v14 = vmul.f32 0.2, %v850_v27  ;;  %vm856_vm15 = vcmp.gt.f32.partialorder %v850_v27, 0.0 }
 0x823   :  { %v870_v62 = vadd.f32 %v864_v59, %v2211_v41  ;;  %v871_v3 = vadd.f32 %v865_v60, %v2213_v48  ;;  %v866_v4 = vsel %vm854_vm13, %v848_v53, %v860_v61  ;;  %v867_v12 = vsel %vm855_vm14, %v849_v1, %v861_v5 }
 0x824   :  { %v872_v10 = vadd.f32 %v866_v4, %v2218_v58  ;;  %v873_v19 = vadd.f32 %v867_v12, %v2222_v2  ;;  %v868_v48 = vsel %vm856_vm15, %v850_v27, %v862_v14  ;;  %v863_v21 = vmul.f32 0.2, %v851_v18 }
 0x825   :  { %v876_v63 = vsel %vm426_vm5, %v870_v62, -inf  ;;  %v879_v9 = vsel %vm426_vm5, %v871_v3, -inf  ;;  %vm857_vm3 = vcmp.gt.f32.partialorder %v851_v18, 0.0  ;;  %v874_v24 = vadd.f32 %v868_v48, %v2226_v8 }
 0x826   :  { %877 = vmax.xlane.f32.xlu0 %v876_v63  ;;  %v882_v41 = vsel %vm426_vm5, %v872_v10, -inf  ;;  %v885_v22 = vsel %vm426_vm5, %v873_v19, -inf  ;;  %v869_v25 = vsel %vm857_vm3, %v851_v18, %v863_v21  ;;  %vm1613_vm11 = vcmask 97280  }
 0x827   :  { %v888_v58 = vsel %vm426_vm5, %v874_v24, -inf  ;;  %v875_v26 = vadd.f32 %v869_v25, %v2230_v13 }
 0x829   :  { %v891_v28 = vsel %vm442_vm10, %v875_v26, -inf }
 0x82a   :  { %880 = vmax.xlane.f32.xlu0 %v879_v9 }
 0x82e   :  { %883 = vmax.xlane.f32.xlu0 %v882_v41 }
 0x832   :  { %886 = vmax.xlane.f32.xlu0 %v885_v22 }
 0x836   :  { %889 = vmax.xlane.f32.xlu0 %v888_v58 }
 0x83a   :  { %892 = vmax.xlane.f32.xlu0 %v891_v28 }
 0x8b3   :  { %v878_v33 = vpop.xlane.xlu0 %877 }
 0x8b4   :  { %v894_v2 = vsub.f32 %v870_v62, %v878_v33 }
 0x8b6   :  { %v900_v31 = vmul.f32 1.442695, %v894_v2 }
 0x8b7   :  { %v881_v35 = vpop.xlane.xlu0 %880 }
 0x8b8   :  { %2027 = vpow2.f32 %v900_v31  ;;  %v895_v36 = vsub.f32 %v871_v3, %v881_v35 }
 0x8ba   :  { %v902_v37 = vmul.f32 1.442695, %v895_v36 }
 0x8bb   :  { %v884_v39 = vpop.xlane.xlu0 %883 }
 0x8bc   :  { %2029 = vpow2.f32 %v902_v37  ;;  %v896_v8 = vsub.f32 %v872_v10, %v884_v39 }
 0x8be   :  { %v904_v44 = vmul.f32 1.442695, %v896_v8 }
 0x8bf   :  { %v887_v45 = vpop.xlane.xlu0 %886 }
 0x8c0   :  { %2031 = vpow2.f32 %v904_v44  ;;  %v897_v46 = vsub.f32 %v873_v19, %v887_v45 }
 0x8c2   :  { %v2028_v47 = vpop.eup %2027  ;;  %v906_v13 = vmul.f32 1.442695, %v897_v46 }
 0x8c3   :  { %v890_v50 = vpop.xlane.xlu0 %889  ;;  %v912_v51 = vsel %vm426_vm5, %v2028_v47, 0.0 }
 0x8c4   :  { %2033 = vpow2.f32 %v906_v13  ;;  %v898_v53 = vsub.f32 %v874_v24, %v890_v50  ;;  %913 = vadd.xlane.f32.xlu0 %v912_v51  ;;  %v2378_v13 = vld [vmem:[#allocation2 + $0x161] ss:$0 sm:$0xff] }
 0x8c6   :  { %v2030_v55 = vpop.eup %2029  ;;  %v908_v56 = vmul.f32 1.442695, %v898_v53 }
 0x8c7   :  { %v942_v57 = vpack.c.bf16 %v2030_v55, %v2028_v47  ;;  %v893_v59 = vpop.xlane.xlu0 %892  ;;  %v915_v60 = vsel %vm426_vm5, %v2030_v55, 0.0 }
 0x8c8   :  { %2035 = vpow2.f32 %v908_v56  ;;  %v899_v61 = vsub.f32 %v875_v26, %v893_v59  ;;  %916 = vadd.xlane.f32.xlu0 %v915_v60 }
 0x8c9   :  { %1901 = vmatmul.mubr.msk.bf16.vlgmr.msra.gmra.mrb[36].mxu0 %vm426_vm5, %v942_v57 }
 0x8ca   :  { %v2032_v1 = vpop.eup %2031  ;;  %v910_v62 = vmul.f32 1.442695, %v899_v61  ;;  %1904 = vmatprep.mubr.msk.bf16.mxu0 %vm2110_vm0, %v2109_v0  ;;  %1929 = vmatpush3.bf16.msra.mxu0 %v2276_v38 }
 0x8cb   :  { %v918_v63 = vsel %vm426_vm5, %v2032_v1, 0.0  ;;  %1930 = vmatprep.subr.bf16.mxu0 %v2109_v0 }
 0x8cc   :  { %2037 = vpow2.f32 %v910_v62  ;;  %919 = vadd.xlane.f32.xlu1 %v918_v63 }
 0x8ce   :  { %v2034_v3 = vpop.eup %2033  ;;  %1931 = vmatpush3.bf16.msra.mxu0 %v2279_v40 }
 0x8cf   :  { %v921_v4 = vsel %vm426_vm5, %v2034_v3, 0.0  ;;  %v943_v5 = vpack.c.bf16 %v2034_v3, %v2032_v1  ;;  %1962 = vmatprep.subr.bf16.mxu0 %v2109_v0 }
 0x8d0   :  { %922 = vadd.xlane.f32.xlu0 %v921_v4 }
 0x8d1   :  { %1905 = vmatmul.mubr.msk.bf16.gmra.mrb[40].mxu0 %vm426_vm5, %v943_v5 }
 0x8d2   :  { %v2036_v27 = vpop.eup %2035  ;;  %1908 = vmatprep.mubr.msk.bf16.mxu0 %vm2110_vm0, %v2109_v0 }
 0x8d3   :  { %v924_v38 = vsel %vm426_vm5, %v2036_v27, 0.0 }
 0x8d4   :  { %925 = vadd.xlane.f32.xlu0 %v924_v38 }
 0x8d6   :  { %v2038_v7 = vpop.eup %2037 }
 0x8d7   :  { %v927_v9 = vsel %vm442_vm10, %v2038_v7, 0.0  ;;  %v944_v10 = vpack.c.bf16 %v2038_v7, %v2036_v27 }
 0x8d8   :  { %928 = vadd.xlane.f32.xlu0 %v927_v9 }
 0x8d9   :  { %1909 = vmatmul.mubr.msk.bf16.gmra.mrb[44].mxu0 %vm426_vm5, %v944_v10 }
 0x8da   :  { %1932 = vmatprep.mubr.msk.bf16.mxu0 %vm2110_vm0, %v2109_v0 }
 0x951   :  { %v914_v40 = vpop.xlane.xlu0 %913 }
 0x952   :  { %2039 = vrcp.f32 %v914_v40 }
 0x955   :  { %v917_v12 = vpop.xlane.xlu0 %916 }
 0x956   :  { %2041 = vrcp.f32 %v917_v12 }
 0x959   :  { %v920_v14 = vpop.xlane.xlu1 %919 }
 0x95a   :  { %2043 = vrcp.f32 %v920_v14 }
 0x95c   :  { %v2040_v18 = vpop.eup %2039 }
 0x95d   :  { %v923_v41 = vpop.xlane.xlu0 %922  ;;  %v936_v19 = vmul.f32 %v2040_v18, %v2254_v6 }
 0x95e   :  { %2045 = vrcp.f32 %v923_v41 }
 0x95f   :  { %1015 = vperm.xlu0 %1999, %v936_v19  }
 0x960   :  { %v2042_v48 = vpop.eup %2041 }
 0x961   :  { %v926_v21 = vpop.xlane.xlu0 %925  ;;  %v937_v22 = vmul.f32 %v2042_v48, %v2257_v11 }
 0x962   :  { %2047 = vrcp.f32 %v926_v21 }
 0x963   :  { %1020 = vperm.xlu0 %1999, %v937_v22  }
 0x964   :  { %v2044_v24 = vpop.eup %2043 }
 0x965   :  { %v929_v25 = vpop.xlane.xlu0 %928  ;;  %v938_v58 = vmul.f32 %v2044_v24, %v2260_v16  ;;  %v75_v24 = vld [vmem:[#allocation2 + $0x140] sm:$0xff] }
 0x966   :  { %2049 = vrcp.f32 %v929_v25  ;;  %v76_v25 = vld [vmem:[#allocation2 + $0x148] sm:$0xff] }
 0x967   :  { %1025 = vperm.xlu1 %2000, %v938_v58  }
 0x968   :  { %v2046_v26 = vpop.eup %2045 }
 0x969   :  { %v939_v28 = vmul.f32 %v2046_v26, %v2263_v20 }
 0x96b   :  { %1030 = vperm.xlu0 %1999, %v939_v28  }
 0x96c   :  { %v2048_v33 = vpop.eup %2047 }
 0x96d   :  { %v940_v6 = vmul.f32 %v2048_v33, %v2266_v23 }
 0x96f   :  { %1035 = vperm.xlu0 %1999, %v940_v6   ;;  %v77_v6 = vld [vmem:[#allocation2 + $0x150] sm:$0xff] }
 0x970   :  { %v2050_v2 = vpop.eup %2049 }
 0x971   :  { %v941_v31 = vmul.f32 %v2050_v2, %v2271_v29  ;;  %v78_v2 = vld [vmem:[#allocation2 + $0x158] sm:$0xff] }
 0x973   :  { %1040 = vperm.xlu0 %1999, %v941_v31  }
 0x99c   :  { %v990_v11 = vpop.f32.mrb[36].mxu0 }
 0x99d   :  { %v1902_v35 = vpop.f32.mrb[37].mxu0 }
 0x99e   :  { %v993_v36 = vpop.f32.mrb[38].mxu0 }
 0x99f   :  { %v1903_v37 = vpop.f32.mrb[39].mxu0 }
 0x9a4   :  { %v998_v39 = vpop.f32.mrb[40].mxu0 }
 0x9a5   :  { %v1906_v16 = vpop.f32.mrb[41].mxu0 }
 0x9a6   :  { %v1001_v8 = vpop.f32.mrb[42].mxu0 }
 0x9a7   :  { %v1907_v44 = vpop.f32.mrb[43].mxu0 }
 0x9ac   :  { %v1006_v45 = vpop.f32.mrb[44].mxu0 }
 0x9ad   :  { %v1910_v46 = vpop.f32.mrb[45].mxu0 }
 0x9ae   :  { %v1009_v20 = vpop.f32.mrb[46].mxu0 }
 0x9af   :  { %v1911_v47 = vpop.f32.mrb[47].mxu0 }
 0x9de   :  { %v1016_v23 = vpop.permute.xlu0 %1015 }
 0x9df   :  { %v1043_v50 = vmul.f32 %v1016_v23, %v990_v11 }
 0x9e1   :  { %v1053_v51 = vadd.f32 %v2378_v13, %v1043_v50 }
 0x9e2   :  { %v1021_v53 = vpop.permute.xlu0 %1020 }
 0x9e3   :  { %v1044_v55 = vmul.f32 %v1021_v53, %v993_v36  ;;  %v1059_v56 = vmax.f32 %v1053_v51, 0.0 }
 0x9e5   :  { %v1054_v57 = vadd.f32 %v2378_v13, %v1044_v55  ;;  %v1065_v1 = vadd.f32 %v1059_v56, %v2285_v15 }
 0x9e6   :  { %v1026_v59 = vpop.permute.xlu1 %1025 }
 0x9e7   :  { %v1060_v60 = vmax.f32 %v1054_v57, 0.0  ;;  %v1045_v61 = vmul.f32 %v1026_v59, %v998_v39 }
 0x9e9   :  { %v1066_v62 = vadd.f32 %v1060_v60, %v2288_v17  ;;  %v1055_v63 = vadd.f32 %v2378_v13, %v1045_v61 }
 0x9ea   :  { %v1031_v3 = vpop.permute.xlu0 %1030 }
 0x9eb   :  { %v1071_v4 = vpack.c.bf16 %v1066_v62, %v1065_v1  ;;  %v1046_v5 = vmul.f32 %v1031_v3, %v1001_v8  ;;  %v1061_v27 = vmax.f32 %v1055_v63, 0.0 }
 0x9ed   :  { %v1056_v38 = vadd.f32 %v2378_v13, %v1046_v5  ;;  %1917 = vmatmul.mubr.msk.bf16.vlgmr.msra.gmra.mrb[36].mxu1 %vm107_vm1, %v1071_v4  ;;  %v1067_v15 = vadd.f32 %v1061_v27, %v2296_v30 }
 0x9ee   :  { %v1036_v7 = vpop.permute.xlu0 %1035  ;;  %1920 = vmatprep.mubr.msk.bf16.mxu1 %vm2110_vm0, %v2109_v0 }
 0x9ef   :  { %v1062_v9 = vmax.f32 %v1056_v38, 0.0  ;;  %v1047_v10 = vmul.f32 %v1036_v7, %v1006_v45 }
 0x9f1   :  { %v1068_v17 = vadd.f32 %v1062_v9, %v2299_v34  ;;  %v1057_v40 = vadd.f32 %v2378_v13, %v1047_v10 }
 0x9f2   :  { %v1041_v12 = vpop.permute.xlu0 %1040 }
 0x9f3   :  { %v1072_v14 = vpack.c.bf16 %v1068_v17, %v1067_v15  ;;  %v1048_v18 = vmul.f32 %v1041_v12, %v1009_v20  ;;  %v1063_v41 = vmax.f32 %v1057_v40, 0.0 }
 0x9f5   :  { %v1058_v19 = vadd.f32 %v2378_v13, %v1048_v18  ;;  %1921 = vmatmul.mubr.msk.bf16.gmra.mrb[40].mxu1 %vm107_vm1, %v1072_v14  ;;  %v2397_v21 = vadd.f32 %v1063_v41, %v2307_v42  ;;  %v79_v42 = vpack.c.bf16 %v76_v25, %v75_v24 }
 0x9f6   :  { %1924 = vmatprep.mubr.msk.bf16.mxu1 %vm2110_vm0, %v2109_v0 }
 0x9f7   :  { %v1064_v48 = vmax.f32 %v1058_v19, 0.0 }
 0x9f9   :  { %v2400_v30 = vadd.f32 %v1064_v48, %v2310_v43  ;;  %v80_v43 = vpack.c.bf16 %v78_v2, %v77_v6 }
 0x9fb   :  { %v1073_v34 = vpack.c.bf16 %v2400_v30, %v2397_v21 }
 0x9fd   :  { %1925 = vmatmul.mubr.msk.bf16.gmra.mrb[44].mxu1 %vm107_vm1, %v1073_v34 }
 0x9fe   :  { %1950 = vmatprep.mubr.msk.bf16.mxu1 %vm2110_vm0, %v2109_v0 }
 0xac0   :  { %v1117_v22 = vpop.f32.mrb[36].mxu1 }
 0xac1   :  { %v1918_v58 = vpop.f32.mrb[37].mxu1 }
 0xac2   :  { %v1120_v26 = vpop.f32.mrb[38].mxu1 }
 0xac3   :  { %v1140_v28 = vpack.c.bf16 %v1120_v26, %v1117_v22  ;;  %v1919_v33 = vpop.f32.mrb[39].mxu1  ;;  %v2075_v26 = vld [vmem:[#allocation2 + $0x168] sm:$0xff] }
 0xac5   :  { %1933 = vmatmul.mubr.msk.bf16.vlgmr.msra.gmra.mrb[48].mxu0 %vm107_vm1, %v1140_v28  ;;  %1945 = vmatpush3.bf16.msra.mxu1 %v1140_v28 }
 0xac6   :  { %1936 = vmatprep.mubr.msk.bf16.mxu0 %vm2110_vm0, %v2109_v0  ;;  %1946 = vmatprep.subr.bf16.mxu1 %v2109_v0 }
 0xac7   :  { %1963 = vmatpush3.bf16.msra.mxu0 %v79_v42  ;;  %v2076_v42 = vld [vmem:[#allocation2 + $0x170] sm:$0xff] }
 0xac8   :  { %v1125_v31 = vpop.f32.mrb[40].mxu1  ;;  %1964 = vmatprep.subr.bf16.mxu0 %v2109_v0 }
 0xac9   :  { %v1922_v11 = vpop.f32.mrb[41].mxu1 }
 0xaca   :  { %v1128_v35 = vpop.f32.mrb[42].mxu1 }
 0xacb   :  { %v1141_v36 = vpack.c.bf16 %v1128_v35, %v1125_v31  ;;  %v1923_v37 = vpop.f32.mrb[43].mxu1  ;;  %1965 = vmatpush3.bf16.msra.mxu0 %v80_v43  ;;  %v2077_v35 = vld [vmem:[#allocation2 + $0x178] sm:$0xff] }
 0xacd   :  { %1937 = vmatmul.mubr.msk.bf16.gmra.mrb[52].mxu0 %vm107_vm1, %v1141_v36  ;;  %1947 = vmatpush3.bf16.msra.mxu1 %v1141_v36 }
 0xace   :  { %1940 = vmatprep.mubr.msk.bf16.mxu0 %vm2110_vm0, %v2109_v0  ;;  %1948 = vmatprep.subr.bf16.mxu1 %v2109_v0 }
 0xad0   :  { %v1133_v39 = vpop.f32.mrb[44].mxu1 }
 0xad1   :  { %v1926_v16 = vpop.f32.mrb[45].mxu1 }
 0xad2   :  { %v1136_v8 = vpop.f32.mrb[46].mxu1 }
 0xad3   :  { %v1142_v44 = vpack.c.bf16 %v1136_v8, %v1133_v39  ;;  %v1927_v45 = vpop.f32.mrb[47].mxu1 }
 0xad5   :  { %v1381_v46 = vsel %vm506_vm2, %v1142_v44, 0  ;;  %1941 = vmatmul.mubr.msk.bf16.gmra.mrb[56].mxu0 %vm107_vm1, %v1142_v44  ;;  %v2078_v44 = vld [vmem:[#allocation2 + $0x180] sm:$0xff] }
 0xad6   :  { %1949 = vmatpush3.bf16.msra.mxu1 %v1381_v46  ;;  %1966 = vmatprep.mubr.msk.bf16.mxu0 %vm2110_vm0, %v2109_v0 }
 0xad7   :  { %1970 = vmatprep.subr.bf16.mxu1 %v2109_v0 }
 0xadd   :  { %1967 = vmatmul.mubr.msk.bf16.vlgmr.msra.gmra.mrb[60].mxu0 %vm107_vm1, %v2183_v54 }
 0xade   :  { %1982 = vmatprep.mubr.msk.f32.mxu0 %vm2110_vm0, %v2109_v0 }
 0xb98   :  { %v1186_v20 = vpop.f32.mrb[48].mxu0 }
 0xb99   :  { %1215 = vrot.lane.b32.xlu0 %v1186_v20, %s2112_s0  ;;  %v1934_v47 = vpop.f32.mrb[49].mxu0 }
 0xb9a   :  { %v1189_v23 = vpop.f32.mrb[50].mxu0 }
 0xb9b   :  { %v1935_v50 = vpop.f32.mrb[51].mxu0 }
 0xb9d   :  { %1217 = vrot.lane.b32.xlu0 %v1189_v23, %s2112_s0 }
 0xba0   :  { %v1194_v51 = vpop.f32.mrb[52].mxu0 }
 0xba1   :  { %1219 = vrot.lane.b32.xlu1 %v1194_v51, %s2112_s0  ;;  %v1938_v53 = vpop.f32.mrb[53].mxu0 }
 0xba2   :  { %v1197_v55 = vpop.f32.mrb[54].mxu0 }
 0xba3   :  { %1221 = vrot.lane.b32.xlu0 %v1197_v55, %s2112_s0  ;;  %v1939_v56 = vpop.f32.mrb[55].mxu0 }
 0xba8   :  { %v1202_v54 = vpop.f32.mrb[56].mxu0 }
 0xba9   :  { %1223 = vrot.lane.b32.xlu1 %v1202_v54, %s2112_s0  ;;  %v1942_v57 = vpop.f32.mrb[57].mxu0 }
 0xbaa   :  { %v1205_v59 = vpop.f32.mrb[58].mxu0 }
 0xbab   :  { %1225 = vrot.lane.b32.xlu0 %v1205_v59, %s2112_s0  ;;  %v1943_v60 = vpop.f32.mrb[59].mxu0 }
 0xbad   :  { %1266 = vperm.xlu1 %2000, %v1186_v20  }
 0xbaf   :  { %1270 = vperm.xlu0 %1999, %v1189_v23   ;;  %v2079_v23 = vld [vmem:[#allocation2 + $0x188] sm:$0xff] }
 0xbb0   :  { %v2431_v61 = vpop.f32.mrb[60].mxu0 }
 0xbb1   :  { %1274 = vperm.xlu1 %2000, %v1194_v51   ;;  %v1968_v1 = vpop.f32.mrb[61].mxu0 }
 0xbb2   :  { %v2433_v62 = vpop.f32.mrb[62].mxu0 }
 0xbb3   :  { %1278 = vperm.xlu0 %1999, %v1197_v55   ;;  %v1969_v63 = vpop.f32.mrb[63].mxu0  ;;  %v2080_v55 = vld [vmem:[#allocation2 + $0x190] sm:$0xf] }
 0xbb5   :  { %1282 = vperm.xlu1 %2000, %v1202_v54  }
 0xbb7   :  { %1286 = vperm.xlu0 %1999, %v1205_v59  }
 0xc0b   :  { %v1216_v3 = vpop.permute.xlu0 %1215 }
 0xc0c   :  { %1233 = vxpose.xlu1.b32.start [1/6] (short) (narrow) %v1216_v3, 8 }
 0xc0f   :  { %v1218_v4 = vpop.permute.xlu0 %1217 }
 0xc10   :  { %1234 = vxpose.xlu1.b32.cont [2/6] (short) (narrow) %v1218_v4, 8 }
 0xc13   :  { %v1220_v5 = vpop.permute.xlu1 %1219 }
 0xc14   :  { %1235 = vxpose.xlu1.b32.cont [3/6] (short) (narrow) %v1220_v5, 8 }
 0xc15   :  { %v1222_v27 = vpop.permute.xlu0 %1221 }
 0xc18   :  { %1236 = vxpose.xlu1.b32.cont [4/6] (short) (narrow) %v1222_v27, 8 }
 0xc1b   :  { %v1224_v38 = vpop.permute.xlu1 %1223 }
 0xc1c   :  { %1237 = vxpose.xlu1.b32.cont [5/6] (short) (narrow) %v1224_v38, 8 }
 0xc1d   :  { %v1226_v7 = vpop.permute.xlu0 %1225 }
 0xc20   :  { %1238 = vxpose.xlu1.b32.end [6/6] (short) (narrow) %v1226_v7, 8 }
 0xc2c   :  { %v1267_v9 = vpop.permute.xlu1 %1266 }
 0xc2e   :  { %v1271_v17 = vpop.permute.xlu0 %1270 }
 0xc30   :  { %v1275_v10 = vpop.permute.xlu1 %1274 }
 0xc32   :  { %v1279_v34 = vpop.permute.xlu0 %1278 }
 0xc34   :  { %v1283_v15 = vpop.permute.xlu1 %1282 }
 0xc36   :  { %v1287_v31 = vpop.permute.xlu0 %1286 }
 0xc8c   :  { %v1249_v40 = vpop.trf.xlu1 }
 0xc8d   :  { %v1292_v12 = vrot.slane %v1249_v40, %v2208_v32 }
 0xc8f   :  { %v1293_v14 = vadd.f32 %v1292_v12, %v1267_v9  ;;  %v1294_v18 = vadd.f32 %v1292_v12, %v1271_v17  ;;  %v1295_v41 = vadd.f32 %v1292_v12, %v1275_v10  ;;  %v1296_v58 = vadd.f32 %v1292_v12, %v1279_v34 }
 0xc90   :  { %v1297_v43 = vadd.f32 %v1292_v12, %v1283_v15  ;;  %v1298_v16 = vadd.f32 %v1292_v12, %v1287_v31  ;;  %v2081_v31 = vld [vmem:[#allocation2 + $0x1b8] sm:$0xff] }
 0xc91   :  { %vm1299_vm2 = vcmp.gt.f32.partialorder %v1293_v14, 0.0  ;;  %v1305_v19 = vmul.f32 0.2, %v1293_v14  ;;  %vm1300_vm4 = vcmp.gt.f32.partialorder %v1294_v18, 0.0  ;;  %v1306_v48 = vmul.f32 0.2, %v1294_v18 }
 0xc92   :  { %v1307_v25 = vmul.f32 0.2, %v1295_v41  ;;  %vm1301_vm6 = vcmp.gt.f32.partialorder %v1295_v41, 0.0  ;;  %v1308_v2 = vmul.f32 0.2, %v1296_v58  ;;  %vm1302_vm7 = vcmp.gt.f32.partialorder %v1296_v58, 0.0 }
 0xc93   :  { %v1311_v22 = vsel %vm1299_vm2, %v1293_v14, %v1305_v19  ;;  %v1312_v24 = vsel %vm1300_vm4, %v1294_v18, %v1306_v48  ;;  %v1309_v39 = vmul.f32 0.2, %v1297_v43  ;;  %vm1303_vm8 = vcmp.gt.f32.partialorder %v1297_v43, 0.0 }
 0xc94   :  { %v1317_v28 = vadd.f32 %v2075_v26, %v1311_v22  ;;  %v1318_v6 = vadd.f32 %v2076_v42, %v1312_v24  ;;  %v1313_v32 = vsel %vm1301_vm6, %v1295_v41, %v1307_v25  ;;  %v1314_v37 = vsel %vm1302_vm7, %v1296_v58, %v1308_v2  ;;  %v70_v42 = vld [vmem:[#allocation2 + $0x128] sm:$0xff] }
 0xc95   :  { %v1319_v36 = vadd.f32 %v2077_v35, %v1313_v32  ;;  %v1320_v45 = vadd.f32 %v2078_v44, %v1314_v37  ;;  %v1315_v46 = vsel %vm1303_vm8, %v1297_v43, %v1309_v39  ;;  %v1310_v20 = vmul.f32 0.2, %v1298_v16  ;;  %v71_v37 = vld [vmem:[#allocation2 + $0x130] sm:$0xff]  ;;  %v72_v39 = vld [vmem:[#allocation2 + $0x138] sm:$0xff] }
 0xc96   :  { %v1323_v33 = vsel %vm426_vm5, %v1317_v28, -inf  ;;  %v1326_v11 = vsel %vm426_vm5, %v1318_v6, -inf  ;;  %vm1304_vm9 = vcmp.gt.f32.partialorder %v1298_v16, 0.0  ;;  %v1321_v50 = vadd.f32 %v2079_v23, %v1315_v46 }
 0xc97   :  { %1324 = vmax.xlane.f32.xlu0 %v1323_v33  ;;  %v1329_v8 = vsel %vm426_vm5, %v1319_v36, -inf  ;;  %v1332_v47 = vsel %vm426_vm5, %v1320_v45, -inf  ;;  %v1316_v51 = vsel %vm1304_vm9, %v1298_v16, %v1310_v20  ;;  %v69_v33 = vld [vmem:[#allocation2 + $0x120] sm:$0xff]  ;;  %v74_v16 = vpack.c.bf16 %v72_v39, %v71_v37 }
 0xc98   :  { %v1335_v53 = vsel %vm426_vm5, %v1321_v50, -inf  ;;  %v1322_v56 = vadd.f32 %v2080_v55, %v1316_v51 }
 0xc9a   :  { %v1338_v54 = vsel %vm442_vm10, %v1322_v56, -inf }
 0xc9b   :  { %1327 = vmax.xlane.f32.xlu0 %v1326_v11 }
 0xc9f   :  { %1330 = vmax.xlane.f32.xlu0 %v1329_v8  ;;  %v55_v8 = vld [vmem:[#allocation2 + $0xd0] sm:$0xff] }
 0xca0   :  { %v1573_v44 = vmul.f32 %v2177_v49, %v55_v8 }
 0xca3   :  { %1333 = vmax.xlane.f32.xlu0 %v1332_v47 }
 0xca7   :  { %1336 = vmax.xlane.f32.xlu0 %v1335_v53 }
 0xcab   :  { %1339 = vmax.xlane.f32.xlu0 %v1338_v54 }
 0xd24   :  { %v1325_v57 = vpop.xlane.xlu0 %1324 }
 0xd25   :  { %v1341_v59 = vsub.f32 %v1317_v28, %v1325_v57 }
 0xd27   :  { %v1347_v60 = vmul.f32 1.442695, %v1341_v59 }
 0xd28   :  { %v1328_v1 = vpop.xlane.xlu0 %1327 }
 0xd29   :  { %v1342_v63 = vsub.f32 %v1318_v6, %v1328_v1  ;;  %2051 = vpow2.f32 %v1347_v60  ;;  %v73_v6 = vpack.c.bf16 %v70_v42, %v69_v33  ;;  %v2113_v33 = vmov 1  }
 0xd2b   :  { %v1349_v3 = vmul.f32 1.442695, %v1342_v63 }
 0xd2c   :  { %v1331_v4 = vpop.xlane.xlu0 %1330 }
 0xd2d   :  { %2053 = vpow2.f32 %v1349_v3  ;;  %v1343_v5 = vsub.f32 %v1319_v36, %v1331_v4 }
 0xd2f   :  { %v1351_v27 = vmul.f32 1.442695, %v1343_v5  ;;  %v53_v5 = vld [vmem:[#allocation2 + $0xc0] sm:$0xff] }
 0xd30   :  { %v1334_v38 = vpop.xlane.xlu0 %1333 }
 0xd31   :  { %v1344_v7 = vsub.f32 %v1320_v45, %v1334_v38  ;;  %2055 = vpow2.f32 %v1351_v27  ;;  %v1575_v45 = vsel %vm107_vm1, %v1573_v44, 0.0 }
 0xd33   :  { %v1353_v9 = vmul.f32 1.442695, %v1344_v7  ;;  %v2052_v17 = vpop.eup %2051 }
 0xd34   :  { %v1337_v10 = vpop.xlane.xlu0 %1336 }
 0xd35   :  { %2057 = vpow2.f32 %v1353_v9  ;;  %v1345_v15 = vsub.f32 %v1321_v50, %v1337_v10  ;;  %v54_v10 = vld [vmem:[#allocation2 + $0xc8] sm:$0xf] }
 0xd37   :  { %v2054_v40 = vpop.eup %2053  ;;  %v1355_v12 = vmul.f32 1.442695, %v1345_v15 }
 0xd38   :  { %v1369_v14 = vpack.c.bf16 %v2054_v40, %v2052_v17  ;;  %v1340_v18 = vpop.xlane.xlu0 %1339 }
 0xd39   :  { %2059 = vpow2.f32 %v1355_v12  ;;  %v1346_v41 = vsub.f32 %v1322_v56, %v1340_v18  ;;  %v1731_v18 = vld [vmem:[#allocation2 + $0x162] ss:$0 sm:$0xff] }
 0xd3a   :  { %1951 = vmatmul.mubr.msk.bf16.vlgmr.msra.gmra.mrb[48].mxu1 %vm426_vm5, %v1369_v14 }
 0xd3b   :  { %v1357_v19 = vmul.f32 1.442695, %v1346_v41  ;;  %1954 = vmatprep.mubr.msk.bf16.mxu1 %vm2110_vm0, %v2109_v0  ;;  %v2056_v48 = vpop.eup %2055  ;;  %1971 = vmatpush3.bf16.msra.mxu1 %v73_v6 }
 0xd3c   :  { %1972 = vmatprep.subr.bf16.mxu1 %v2109_v0 }
 0xd3d   :  { %2061 = vpow2.f32 %v1357_v19 }
 0xd3f   :  { %v2058_v34 = vpop.eup %2057  ;;  %1973 = vmatpush3.bf16.msra.mxu1 %v74_v16  ;;  %v2114_v16 = vmov 0.0|0.0  }
 0xd40   :  { %v1370_v22 = vpack.c.bf16 %v2058_v34, %v2056_v48  ;;  %1985 = vmatprep.subr.bf16.mxu0 %v2114_v16 }
 0xd42   :  { %1955 = vmatmul.mubr.msk.bf16.gmra.mrb[52].mxu1 %vm426_vm5, %v1370_v22 }
 0xd43   :  { %v2060_v24 = vpop.eup %2059  ;;  %1958 = vmatprep.mubr.msk.bf16.mxu1 %vm2110_vm0, %v2109_v0 }
 0xd44   :  { %v1359_v25 = vsel %vm426_vm5, %v2060_v24, 0.0 }
 0xd45   :  { %1360 = vadd.xlane.f32.xlu0 %v1359_v25 }
 0xd47   :  { %v2062_v58 = vpop.eup %2061 }
 0xd48   :  { %v1362_v26 = vsel %vm442_vm10, %v2062_v58, 0.0  ;;  %v1371_v28 = vpack.c.bf16 %v2062_v58, %v2060_v24 }
 0xd49   :  { %1363 = vadd.xlane.f32.xlu0 %v1362_v26 }
 0xd4a   :  { %1959 = vmatmul.mubr.msk.bf16.gmra.mrb[56].mxu1 %vm426_vm5, %v1371_v28  ;;  %vm2115_vm5 = vmmov 1  }
 0xd4b   :  { %1974 = vmatprep.mubr.msk.bf16.mxu1 %vm2110_vm0, %v2109_v0  ;;  %v56_v0 = vld [vmem:[#allocation2 + $0xd8] sm:$0xf]  ;;  %vm1569_vm0 = vcmask 257024  }
 0xd4c   :  { %v1574_v46 = vmul.f32 %v2179_v52, %v56_v0 }
 0xd4e   :  { %v1578_v20 = vsel %vm1569_vm0, %v1574_v46, 0.0 }
 0xdd2   :  { %v1361_v32 = vpop.xlane.xlu0 %1360 }
 0xdd3   :  { %2063 = vrcp.f32 %v1361_v32 }
 0xdd6   :  { %v1364_v2 = vpop.xlane.xlu0 %1363 }
 0xdd7   :  { %2065 = vrcp.f32 %v1364_v2 }
 0xddd   :  { %v2064_v43 = vpop.eup %2063 }
 0xdde   :  { %v1367_v11 = vmul.f32 %v2081_v31, %v2064_v43 }
 0xde0   :  { %1438 = vperm.xlu1 %2000, %v1367_v11  }
 0xde1   :  { %v2066_v35 = vpop.eup %2065 }
 0xde2   :  { %v1368_v36 = vmul.f32 %v2066_v35, %v2271_v29 }
 0xde4   :  { %1443 = vperm.xlu0 %1999, %v1368_v36  }
 0xe03   :  { %1576 = vadd.xlane.f32.xlu0 %v1575_v45 }
 0xe07   :  { %1579 = vadd.xlane.f32.xlu0 %v1578_v20  ;;  %v96_v20 = vld [vmem:[#allocation2 + $0x1c8] sm:$0xff] }
 0xe0d   :  { %v1417_v47 = vpop.f32.mrb[48].mxu1 }
 0xe0e   :  { %v1952_v29 = vpop.f32.mrb[49].mxu1 }
 0xe0f   :  { %v1419_v23 = vpop.f32.mrb[50].mxu1  ;;  %v98_v29 = vld [vmem:[#allocation2 + $0x1d8] sm:$0xff] }
 0xe10   :  { %v1953_v50 = vpop.f32.mrb[51].mxu1 }
 0xe11   :  { %v97_v50 = vld [vmem:[#allocation2 + $0x1d0] sm:$0xf] }
 0xe15   :  { %v1423_v51 = vpop.f32.mrb[52].mxu1 }
 0xe16   :  { %v1956_v53 = vpop.f32.mrb[53].mxu1 }
 0xe17   :  { %v1425_v55 = vpop.f32.mrb[54].mxu1  ;;  %v99_v53 = vld [vmem:[#allocation2 + $0x1e0] sm:$0xf] }
 0xe18   :  { %v1957_v56 = vpop.f32.mrb[55].mxu1  ;;  %v100_v55 = vld [vmem:[#allocation2 + $0x1e8] sm:$0xff] }
 0xe1d   :  { %v1429_v54 = vpop.f32.mrb[56].mxu1 }
 0xe1e   :  { %v1960_v49 = vpop.f32.mrb[57].mxu1 }
 0xe1f   :  { %v1432_v57 = vpop.f32.mrb[58].mxu1 }
 0xe20   :  { %v1961_v59 = vpop.f32.mrb[59].mxu1 }
 0xe5f   :  { %v1439_v60 = vpop.permute.xlu1 %1438 }
 0xe60   :  { %v1446_v1 = vmul.f32 %v1439_v60, %v1429_v54 }
 0xe62   :  { %v1448_v52 = vadd.f32 %v2378_v13, %v1446_v1 }
 0xe63   :  { %v1444_v63 = vpop.permute.xlu0 %1443 }
 0xe64   :  { %v1450_v3 = vmax.f32 %v1448_v52, 0.0  ;;  %v1447_v4 = vmul.f32 %v1444_v63, %v1432_v57  ;;  %v101_v57 = vld [vmem:[#allocation2 + $0x1f0] sm:$0xf] }
 0xe66   :  { %v1452_v27 = vadd.f32 %v1450_v3, %v2397_v21  ;;  %v1449_v38 = vadd.f32 %v2378_v13, %v1447_v4 }
 0xe68   :  { %v1451_v7 = vmax.f32 %v1449_v38, 0.0  ;;  %v1564_v9 = vmul.f32 %v1452_v27, %v53_v5 }
 0xe6a   :  { %v1453_v15 = vadd.f32 %v1451_v7, %v2400_v30  ;;  %v1566_v17 = vsel %vm107_vm1, %v1564_v9, 0.0  ;;  %v102_v7 = vld [vmem:[#allocation2 + $0x1f8] sm:$0xff]  ;;  %v103_v9 = vld [vmem:[#allocation2 + $0x200] sm:$0xff] }
 0xe6b   :  { %1567 = vadd.xlane.f32.xlu0 %v1566_v17 }
 0xe6c   :  { %v1454_v40 = vpack.c.bf16 %v1453_v15, %v1452_v27  ;;  %v1565_v12 = vmul.f32 %v1453_v15, %v54_v10 }
 0xe6e   :  { %1975 = vmatmul.mubr.msk.bf16.vlgmr.msra.gmra.mrb[60].mxu1 %vm107_vm1, %v1454_v40  ;;  %v1570_v14 = vsel %vm1569_vm0, %v1565_v12, 0.0  ;;  %vm1617_vm1 = vcmask 1043456  }
 0xe6f   :  { %1571 = vadd.xlane.f32.xlu1 %v1570_v14  ;;  %vm1987_vm10 = vmpackc.low %vm1617_vm1, %vm2115_vm5 }
 0xe90   :  { %v1577_v8 = vpop.xlane.xlu0 %1576 }
 0xe94   :  { %v1580_v44 = vpop.xlane.xlu0 %1579 }
 0xef8   :  { %v1568_v45 = vpop.xlane.xlu0 %1567 }
 0xef9   :  { %v1581_v23 = vadd.f32 %v1577_v8, %v1568_v45 }
 0xefb   :  { %v1609_v63 = vmul.f32 %v1581_v23, %v100_v55 }
 0xefc   :  { %v1572_v0 = vpop.xlane.xlu1 %1571 }
 0xefd   :  { %v1582_v56 = vadd.f32 %v1580_v44, %v1572_v0 }
 0xeff   :  { %v1610_v3 = vmul.f32 %v1582_v56, %v101_v57 }
 0xf41   :  { %v1533_v41 = vpop.f32.mrb[60].mxu1 }
 0xf42   :  { %v1534_v21 = vadd.f32 %v1533_v41, %v2431_v61  ;;  %v1976_v13 = vpop.f32.mrb[61].mxu1 }
 0xf43   :  { %v1536_v19 = vpop.f32.mrb[62].mxu1 }
 0xf44   :  { %v1544_v48 = vadd.f32 %v1731_v18, %v1534_v21  ;;  %v1537_v34 = vadd.f32 %v1536_v19, %v2433_v62  ;;  %v1977_v30 = vpop.f32.mrb[63].mxu1 }
 0xf46   :  { %v1548_v22 = vand.u32 2147483647, %v1544_v48  ;;  %v1545_v24 = vadd.f32 %v1731_v18, %v1537_v34  ;;  %1585 = vperm.xlu0 %1999, %v1544_v48   ;;  %v1546_v43 = vmax.f32 %v1544_v48, 0.0 }
 0xf48   :  { %v1550_v25 = vsub.f32 0.0, %v1548_v22  ;;  %v1549_v58 = vand.u32 2147483647, %v1545_v24  ;;  %1590 = vperm.xlu1 %2000, %v1545_v24   ;;  %v1547_v35 = vmax.f32 %v1545_v24, 0.0 }
 0xf4a   :  { %v1552_v26 = vmul.f32 1.442695, %v1550_v25  ;;  %v1551_v28 = vsub.f32 0.0, %v1549_v58  ;;  %2002 = vset.pattern.permute.xlu0 %v2113_v33 }
 0xf4c   :  { %2067 = vpow2.f32 %v1552_v26  ;;  %v1554_v42 = vmul.f32 1.442695, %v1551_v28  ;;  %2001 = vset.pattern.permute.xlu1 %v2113_v33 }
 0xf4e   :  { %2069 = vpow2.f32 %v1554_v42 }
 0xf56   :  { %v2068_v61 = vpop.eup %2067 }
 0xf57   :  { %v1556_v6 = vadd.f32 1.0, %v2068_v61 }
 0xf58   :  { %v2070_v32 = vpop.eup %2069 }
 0xf59   :  { %v1557_v2 = vadd.f32 1.0, %v2070_v32  ;;  %2071 = vlog2.f32 %v1556_v6 }
 0xf5b   :  { %2073 = vlog2.f32 %v1557_v2 }
 0xf63   :  { %v2072_v62 = vpop.eup %2071 }
 0xf64   :  { %v1559_v31 = vmul.f32 0.6931472, %v2072_v62 }
 0xf65   :  { %v2074_v11 = vpop.eup %2073 }
 0xf66   :  { %v1562_v36 = vadd.f32 %v1559_v31, %v1546_v43  ;;  %v1561_v37 = vmul.f32 0.6931472, %v2074_v11 }
 0xf68   :  { %1597 = vperm.xlu1 %2001, %v1562_v36   ;;  %v1563_v39 = vadd.f32 %v1561_v37, %v1547_v35 }
 0xf6a   :  { %1602 = vperm.xlu0 %2002, %v1563_v39  }
 0xfc5   :  { %v1586_v47 = vpop.permute.xlu0 %1585 }
 0xfc6   :  { %v1593_v54 = vmul.f32 %v1586_v47, %v96_v20 }
 0xfc7   :  { %v1591_v46 = vpop.permute.xlu1 %1590 }
 0xfc8   :  { %v1594_v60 = vmul.f32 %v1591_v46, %v97_v50 }
 0xfe7   :  { %v1598_v51 = vpop.permute.xlu1 %1597 }
 0xfe8   :  { %v1605_v49 = vmul.f32 %v1598_v51, %v98_v29 }
 0xfe9   :  { %v1603_v59 = vpop.permute.xlu0 %1602 }
 0xfea   :  { %v1607_v1 = vadd.f32 %v1605_v49, %v1593_v54  ;;  %v1606_v52 = vmul.f32 %v1603_v59, %v99_v53 }
 0xfec   :  { %v1608_v4 = vadd.f32 %v1606_v52, %v1594_v60  ;;  %v1611_v5 = vadd.f32 %v1609_v63, %v1607_v1 }
 0xfee   :  { %v1612_v27 = vadd.f32 %v1610_v3, %v1608_v4 }
 0xff0   :  { %v1986_v38 = vpack.c.bf16 %v1612_v27, %v1611_v5 }
 0xff2   :  { %1988 = vmatpush3.bf16.msk.msra.mxu0 %vm1987_vm10, %v1986_v38 }
 0xff5   :  { %1983 = vmatmul.mubr.msk.f32.vlgmr.msra.gmra.mrb[64].mxu0 %vm1613_vm11, %v102_v7 }
0x10c8   :  { %v1687_v10 = vpop.f32.mrb[64].mxu0 }
0x10c9   :  { %v1688_v15 = vadd.f32 %v1687_v10, %v103_v9  ;;  %v1984_v17 = vpop.f32.mrb[65].mxu0 }
0x10cb   :  { %1691 = vst [vmem:[%s2472_s1] sm:$0xff] %v1688_v15 }
0x10cc   :  { %1696 = vsyncpa [#allocation3], 1 }

</bundles_post_ra>
